<compile_context>
chip_gen: v6e
topology: v6e:2x2x1
jax: 0.10.0
libtpu: 0.0.40
codegen_flags: <defaults>
</compile_context>

<pallas_src>
import math

import jax
import jax.numpy as jnp
from jax.experimental import pallas as pl
from jax.experimental.pallas import tpu as pltpu


def _make_priornet_kernel(num_hidden: int, ih_last: int, d_out: int):
    """Fused ensemble-MLP + epistemic-index weighting on one batch tile.

    Kernel args:
      x_ref : (TB, D_in)  bf16   batch-major input tile
      z_ref : (TB, I)     f32    batch-major epistemic index tile
      then per hidden layer l: W_lT (rows_l, prev) bf16, b_l (rows_l, 1) f32
      then G (I*H_last + D_out, I) f32   [z-repeat selection + b_last^T]
      then w_last: (I*H_last, 1) f32 if D_out==1 else (D_out, I*H_last) bf16
      out_ref : (D_out, TB) f32  feature-major (lane-dense) output tile
    """

    def kernel(x_ref, z_ref, *refs):
        out_ref = refs[-1]
        params = refs[:-1]

        # ---- fused hidden stack (all ensemble members at once) ----
        xt = x_ref[...]                                      # (TB, D_in) bf16
        h32 = None
        h_op = None
        for l in range(num_hidden):
            w = params[2 * l][...]                           # (rows_l, prev) bf16
            b = params[2 * l + 1][...]                       # (rows_l, 1)  f32
            if l == 0:
                # Contract W's input dim against the batch-major x tile
                # (A @ B^T form -> no host-side x transpose needed).
                acc = jax.lax.dot_general(
                    w, xt, (((1,), (1,)), ((), ())),
                    preferred_element_type=jnp.float32)      # (rows_0, TB)
            else:
                acc = jnp.dot(w, h_op, preferred_element_type=jnp.float32)
            h32 = jnp.maximum(acc + b, 0.0)                  # bias + ReLU in f32
            h_op = h32.astype(jnp.bfloat16)                  # next MXU operand

        # ---- epistemic-index weighting reconstructed in-kernel from z ----
        # zz rows [0:IH)        = z repeated per ensemble member (member-major)
        # zz rows [IH:IH+D_out) = z-weighted last-layer bias  (b_last^T @ z^T)
        g = params[2 * num_hidden][...]                      # (IH + D_out, I) f32
        zz = jax.lax.dot_general(
            g, z_ref[...], (((1,), (1,)), ((), ())),
            preferred_element_type=jnp.float32)              # (IH + D_out, TB)
        zh = h32 * zz[:ih_last]                              # (IH, TB) f32
        bias_term = zz[ih_last:]                             # (D_out, TB) f32

        w_last = params[2 * num_hidden + 1][...]
        if d_out == 1:
            # Skip the M=1 MXU matmul: VPU multiply + XLU sublane reduction.
            out = jnp.sum(w_last * zh, axis=0, keepdims=True) + bias_term
        else:
            out = jnp.dot(w_last, zh.astype(w_last.dtype),
                          preferred_element_type=jnp.float32) + bias_term
        out_ref[...] = out.astype(out_ref.dtype)

    return kernel


def _fuse_ensemble(member_params, *, weight_dtype=jnp.bfloat16):
    """Fuse per-member MLP params into concatenated / block-diagonal matrices.

    member_params: list (len = index_dim) of per-layer (W(in,out), b(out,)).
    Returns flat list [W1T, b1, ..., W_hT, b_h, G, w_last].
    """
    num_members = len(member_params)
    num_layers = len(member_params[0])
    assert num_layers >= 2, "fusion path assumes at least one hidden layer"
    fused = []

    # First layer: same input for every member -> concat weights along outputs.
    w0 = jnp.concatenate([member_params[i][0][0] for i in range(num_members)], axis=1)
    b0 = jnp.concatenate([member_params[i][0][1] for i in range(num_members)], axis=0)
    fused += [w0.T.astype(weight_dtype), b0[:, None].astype(jnp.float32)]

    # Middle hidden layers: block-diagonal so members stay independent.
    for l in range(1, num_layers - 1):
        w_bd = jax.scipy.linalg.block_diag(
            *[member_params[i][l][0] for i in range(num_members)])
        b_l = jnp.concatenate([member_params[i][l][1] for i in range(num_members)], axis=0)
        fused += [w_bd.T.astype(weight_dtype), b_l[:, None].astype(jnp.float32)]

    # Last layer.
    h_last = member_params[0][-1][0].shape[0]
    d_out = member_params[0][-1][0].shape[1]
    w_last = jnp.concatenate(
        [member_params[i][-1][0] for i in range(num_members)], axis=0)   # (I*H_last, D_out)
    b_last = jnp.stack(
        [member_params[i][-1][1] for i in range(num_members)], axis=0)   # (I, D_out)

    # G: one tiny in-kernel matmul G @ z^T yields both the per-member-repeated z
    # (rows 0:I*H_last) and the z-weighted last-layer bias (last D_out rows).
    # This replaces the previously HBM-streamed zrepT and the separate bias matmul.
    sel = jnp.kron(jnp.eye(num_members, dtype=jnp.float32),
                   jnp.ones((h_last, 1), jnp.float32))                   # (I*H_last, I)
    g = jnp.concatenate([sel, b_last.T.astype(jnp.float32)], axis=0)     # (I*H_last+D_out, I)

    if d_out == 1:
        wl = w_last.astype(jnp.float32)          # (I*H_last, 1): VPU/XLU path, stays f32
    else:
        wl = w_last.T.astype(weight_dtype)       # (D_out, I*H_last): MXU path
    fused += [g, wl]
    return fused


def priornet_forward(x, z, member_params, *, batch_tile=256):
    """Priornet.forward.

    x: (B, input_dim), z: (B, index_dim).
    member_params: list (len index_dim) of per-layer (W(in,out), b(out,)).
    Returns (B, output_dim) float32.
    """
    B, D_in = x.shape
    index_dim = len(member_params)
    assert z.shape == (B, index_dim)
    num_layers = len(member_params[0])
    num_hidden = num_layers - 1
    assert num_hidden >= 1, "fusion path assumes at least one hidden layer"
    H_last = member_params[0][-1][0].shape[0]
    D_out = member_params[0][-1][0].shape[1]
    ih_last = index_dim * H_last

    fused = _fuse_ensemble(member_params)

    # Keep >= 4 batch tiles when the batch allows it (>=2 per v7x TensorCore, so
    # each core gets DMA/compute overlap); otherwise shrink the tile.
    batch_tile = int(batch_tile)
    while batch_tile > 128 and B < 4 * batch_tile:
        batch_tile //= 2
    Bp = pl.cdiv(B, batch_tile) * batch_tile

    # Streamed x in bf16 (MXU-native, halves activation bytes); z stays f32
    # (4 lanes -> negligible bytes) so the epistemic weighting path is exact.
    xb = x.astype(jnp.bfloat16)
    zb = z.astype(jnp.float32)
    if Bp != B:
        xb = jnp.pad(xb, ((0, Bp - B), (0, 0)))
        zb = jnp.pad(zb, ((0, Bp - B), (0, 0)))

    kernel = _make_priornet_kernel(num_hidden, ih_last, D_out)

    in_specs = [
        pl.BlockSpec((batch_tile, D_in), lambda i: (i, 0)),
        pl.BlockSpec((batch_tile, index_dim), lambda i: (i, 0)),
    ]
    # Fused weights/biases are tiny: keep each fully resident (constant block).
    in_specs += [pl.BlockSpec(p.shape, lambda i: (0, 0)) for p in fused]

    outT = pl.pallas_call(
        kernel,
        out_shape=jax.ShapeDtypeStruct((D_out, Bp), jnp.float32),
        grid=(Bp // batch_tile,),
        in_specs=in_specs,
        # Feature-major output: batch on the lane axis -> lane-dense stores even
        # when output_dim == 1.
        out_specs=pl.BlockSpec((D_out, batch_tile), lambda i: (0, i)),
        compiler_params=pltpu.CompilerParams(
            dimension_semantics=("parallel",),
        ),
    )(xb, zb, *fused)

    # For D_out == 1 this transpose is just a reshape; the lane-dense kernel
    # store is worth far more than this tiny host-side relabel.
    return outT.T[:B]


def _init_mlp_params(key, dims):
    """Deterministic init mimicking torch.nn.Linear default U(-1/sqrt(fan_in), ..)."""
    params = []
    for i in range(len(dims) - 1):
        fan_in, fan_out = dims[i], dims[i + 1]
        key, kw, kb = jax.random.split(key, 3)
        bound = 1.0 / math.sqrt(fan_in)
        w = jax.random.uniform(kw, (fan_in, fan_out), jnp.float32, -bound, bound)
        b = jax.random.uniform(kb, (fan_out,), jnp.float32, -bound, bound)
        params.append((w, b))
    return params


def _ref_priornet_forward(x, z, member_params):
    outs = []
    for params in member_params:
        h = x
        for l, (w, b) in enumerate(params):
            h = h @ w + b
            if l < len(params) - 1:
                h = jnp.maximum(h, 0.0)
        outs.append(h)
    outputs = jnp.stack(outs, axis=0)              # (I, B, D_out)
    return jnp.einsum('ijk,ji->jk', outputs, z)    # (B, D_out)


if __name__ == "__main__":
    # Shapes consistent with the module: x already contains the concatenated
    # input + epistemic index (input_dim=20), hidden_dims=[32,32], output_dim=1,
    # index_dim=4 ensemble members. batch=1024 with batch_tile=256 -> 4 grid
    # tiles (>=2 per v7x TensorCore).
    input_dim, hidden_dims, output_dim, index_dim = 20, [32, 32], 1, 4
    batch = 1024

    key = jax.random.PRNGKey(0)
    kx, kz, kp = jax.random.split(key, 3)

    dims = [input_dim] + hidden_dims + [output_dim]
    member_params = []
    for _ in range(index_dim):
        kp, ki = jax.random.split(kp)
        member_params.append(_init_mlp_params(ki, dims))

    x = jax.random.normal(kx, (batch, input_dim), jnp.float32)
    z = jax.random.normal(kz, (batch, index_dim), jnp.float32)

    out = priornet_forward(x, z, member_params, batch_tile=256)
    out = jax.block_until_ready(out)

    ref = _ref_priornet_forward(x, z, member_params)
    assert out.shape == (batch, output_dim)
    max_err = jnp.max(jnp.abs(out - ref))
    # bf16 weights/activations on the MXU (f32 accumulation) -> loosened tolerance.
    assert jnp.allclose(out, ref, atol=5e-2, rtol=5e-2), (
        f"mismatch vs JAX reference: max abs err {max_err}")

    print("KERNEL_OK")
</pallas_src>

<mosaic_0001>
module attributes {stable_mosaic.version = 11 : i64} {
  func.func @kernel(%arg0: i32, %arg1: memref<256x20xbf16, #tpu.memory_space<vmem>>, %arg2: memref<256x4xf32, #tpu.memory_space<vmem>>, %arg3: memref<128x20xbf16, #tpu.memory_space<vmem>>, %arg4: memref<128x1xf32, #tpu.memory_space<vmem>>, %arg5: memref<128x128xbf16, #tpu.memory_space<vmem>>, %arg6: memref<128x1xf32, #tpu.memory_space<vmem>>, %arg7: memref<129x4xf32, #tpu.memory_space<vmem>>, %arg8: memref<128x1xf32, #tpu.memory_space<vmem>>, %arg9: memref<1x256xf32, #tpu.memory_space<vmem>>) attributes {dimension_semantics = [#tpu.dimension_semantics<parallel>], iteration_bounds = array<i64: 4>, scalar_prefetch = 0 : i64, scratch_operands = 0 : i64, tpu.core_type = #tpu.core_type<tc>, window_params = [{transform_indices = @transform_0, window_bounds = array<i64: 256, 20>}, {transform_indices = @transform_1, window_bounds = array<i64: 256, 4>}, {pipeline_mode = #tpu.pipeline_mode<synchronous>, transform_indices = @transform_2, window_bounds = array<i64: 128, 20>}, {pipeline_mode = #tpu.pipeline_mode<synchronous>, transform_indices = @transform_3, window_bounds = array<i64: 128, 1>}, {pipeline_mode = #tpu.pipeline_mode<synchronous>, transform_indices = @transform_4, window_bounds = array<i64: 128, 128>}, {pipeline_mode = #tpu.pipeline_mode<synchronous>, transform_indices = @transform_5, window_bounds = array<i64: 128, 1>}, {pipeline_mode = #tpu.pipeline_mode<synchronous>, transform_indices = @transform_6, window_bounds = array<i64: 129, 4>}, {pipeline_mode = #tpu.pipeline_mode<synchronous>, transform_indices = @transform_7, window_bounds = array<i64: 128, 1>}, {transform_indices = @transform_8, window_bounds = array<i64: 1, 256>}]} {
    %c0 = arith.constant 0 : index
    %c0_0 = arith.constant 0 : index
    %0 = vector.load %arg1[%c0, %c0_0] : memref<256x20xbf16, #tpu.memory_space<vmem>>, vector<256x20xbf16>
    %c0_1 = arith.constant 0 : index
    %c0_2 = arith.constant 0 : index
    %1 = vector.load %arg3[%c0_1, %c0_2] : memref<128x20xbf16, #tpu.memory_space<vmem>>, vector<128x20xbf16>
    %c0_3 = arith.constant 0 : index
    %c0_4 = arith.constant 0 : index
    %2 = vector.load %arg4[%c0_3, %c0_4] : memref<128x1xf32, #tpu.memory_space<vmem>>, vector<128x1xf32>
    %cst = arith.constant dense<0.000000e+00> : vector<128x256xf32>
    %3 = tpu.matmul %1, %0, %cst {dimension_numbers = #tpu.dot_dimension_numbers<[1], [1], [0], [0], [0, 0, 1, 0], [], []>} : vector<128x20xbf16>, vector<256x20xbf16>, vector<128x256xf32> -> vector<128x256xf32>
    %4 = vector.broadcast %2 : vector<128x1xf32> to vector<128x256xf32>
    %5 = arith.addf %3, %4 : vector<128x256xf32>
    %cst_5 = arith.constant 0.000000e+00 : f32
    %6 = vector.broadcast %cst_5 : f32 to vector<128x256xf32>
    %7 = arith.maximumf %5, %6 : vector<128x256xf32>
    %8 = arith.truncf %7 : vector<128x256xf32> to vector<128x256xbf16>
    %c0_6 = arith.constant 0 : index
    %c0_7 = arith.constant 0 : index
    %9 = vector.load %arg5[%c0_6, %c0_7] : memref<128x128xbf16, #tpu.memory_space<vmem>>, vector<128x128xbf16>
    %c0_8 = arith.constant 0 : index
    %c0_9 = arith.constant 0 : index
    %10 = vector.load %arg6[%c0_8, %c0_9] : memref<128x1xf32, #tpu.memory_space<vmem>>, vector<128x1xf32>
    %cst_10 = arith.constant dense<0.000000e+00> : vector<128x256xf32>
    %11 = tpu.matmul %9, %8, %cst_10 {dimension_numbers = #tpu.dot_dimension_numbers<[1], [0], [0], [1], [0, 0, 1, 1], [], []>} : vector<128x128xbf16>, vector<128x256xbf16>, vector<128x256xf32> -> vector<128x256xf32>
    %12 = vector.broadcast %10 : vector<128x1xf32> to vector<128x256xf32>
    %13 = arith.addf %11, %12 : vector<128x256xf32>
    %cst_11 = arith.constant 0.000000e+00 : f32
    %14 = vector.broadcast %cst_11 : f32 to vector<128x256xf32>
    %15 = arith.maximumf %13, %14 : vector<128x256xf32>
    %c0_12 = arith.constant 0 : index
    %c0_13 = arith.constant 0 : index
    %16 = vector.load %arg7[%c0_12, %c0_13] : memref<129x4xf32, #tpu.memory_space<vmem>>, vector<129x4xf32>
    %c0_14 = arith.constant 0 : index
    %c0_15 = arith.constant 0 : index
    %17 = vector.load %arg2[%c0_14, %c0_15] : memref<256x4xf32, #tpu.memory_space<vmem>>, vector<256x4xf32>
    %cst_16 = arith.constant dense<0.000000e+00> : vector<129x256xf32>
    %18 = tpu.matmul %16, %17, %cst_16 {dimension_numbers = #tpu.dot_dimension_numbers<[1], [1], [0], [0], [0, 0, 1, 0], [], []>} : vector<129x4xf32>, vector<256x4xf32>, vector<129x256xf32> -> vector<129x256xf32>
    %19 = vector.extract_strided_slice %18 {offsets = [0, 0], sizes = [128, 256], strides = [1, 1]} : vector<129x256xf32> to vector<128x256xf32>
    %20 = arith.mulf %15, %19 : vector<128x256xf32>
    %21 = vector.extract_strided_slice %18 {offsets = [128, 0], sizes = [1, 256], strides = [1, 1]} : vector<129x256xf32> to vector<1x256xf32>
    %c0_17 = arith.constant 0 : index
    %c0_18 = arith.constant 0 : index
    %22 = vector.load %arg8[%c0_17, %c0_18] : memref<128x1xf32, #tpu.memory_space<vmem>>, vector<128x1xf32>
    %23 = vector.broadcast %22 : vector<128x1xf32> to vector<128x256xf32>
    %24 = arith.mulf %23, %20 : vector<128x256xf32>
    %cst_19 = arith.constant dense<0.000000e+00> : vector<256xf32>
    %25 = vector.multi_reduction <add>, %24, %cst_19 [0] : vector<128x256xf32> to vector<256xf32>
    %26 = vector.shape_cast %25 : vector<256xf32> to vector<1x256xf32>
    %27 = arith.addf %26, %21 : vector<1x256xf32>
    %c0_20 = arith.constant 0 : index
    %c0_21 = arith.constant 0 : index
    %28 = vector.load %arg9[%c0_20, %c0_21] : memref<1x256xf32, #tpu.memory_space<vmem>>, vector<1x256xf32>
    tpu.vector_store %arg9[%c0_20, %c0_21], %27 {strides = array<i32>} : memref<1x256xf32, #tpu.memory_space<vmem>>, vector<1x256xf32>,
    return
  }
  func.func @transform_0(%arg0: i32) -> (i32, i32) {
    %c0_i32 = arith.constant 0 : i32
    %c0_i32_0 = arith.constant 0 : i32
    return %arg0, %c0_i32 : i32, i32
  }
  func.func @transform_1(%arg0: i32) -> (i32, i32) {
    %c0_i32 = arith.constant 0 : i32
    %c0_i32_0 = arith.constant 0 : i32
    return %arg0, %c0_i32 : i32, i32
  }
  func.func @transform_2(%arg0: i32) -> (i32, i32) {
    %c0_i32 = arith.constant 0 : i32
    %c0_i32_0 = arith.constant 0 : i32
    %c0_i32_1 = arith.constant 0 : i32
    return %c0_i32, %c0_i32_0 : i32, i32
  }
  func.func @transform_3(%arg0: i32) -> (i32, i32) {
    %c0_i32 = arith.constant 0 : i32
    %c0_i32_0 = arith.constant 0 : i32
    %c0_i32_1 = arith.constant 0 : i32
    return %c0_i32, %c0_i32_0 : i32, i32
  }
  func.func @transform_4(%arg0: i32) -> (i32, i32) {
    %c0_i32 = arith.constant 0 : i32
    %c0_i32_0 = arith.constant 0 : i32
    %c0_i32_1 = arith.constant 0 : i32
    return %c0_i32, %c0_i32_0 : i32, i32
  }
  func.func @transform_5(%arg0: i32) -> (i32, i32) {
    %c0_i32 = arith.constant 0 : i32
    %c0_i32_0 = arith.constant 0 : i32
    %c0_i32_1 = arith.constant 0 : i32
    return %c0_i32, %c0_i32_0 : i32, i32
  }
  func.func @transform_6(%arg0: i32) -> (i32, i32) {
    %c0_i32 = arith.constant 0 : i32
    %c0_i32_0 = arith.constant 0 : i32
    %c0_i32_1 = arith.constant 0 : i32
    return %c0_i32, %c0_i32_0 : i32, i32
  }
  func.func @transform_7(%arg0: i32) -> (i32, i32) {
    %c0_i32 = arith.constant 0 : i32
    %c0_i32_0 = arith.constant 0 : i32
    %c0_i32_1 = arith.constant 0 : i32
    return %c0_i32, %c0_i32_0 : i32, i32
  }
  func.func @transform_8(%arg0: i32) -> (i32, i32) {
    %c0_i32 = arith.constant 0 : i32
    %c0_i32_0 = arith.constant 0 : i32
    return %c0_i32, %arg0 : i32, i32
  }
}

</mosaic_0001>

<bundles_post_ra>
// kernel: tpu_custom_call.1
= control target key start
LH: loop header
LB: loop body
LE: loop exit
PB: predicated region body
PF: predicated region fallthrough
CT: control target
= control target key end

     0   :  { %13 = vsyncpa [#allocation3], 0  ;;  %s3041_s0 = inlined_call_operand.vmem [shape: bf16[1024,20], index: 0, kind: input, shape index: {}]   ;;  %s3042_s1 = inlined_call_operand.vmem [shape: f32[1024,4], index: 1, kind: input, shape index: {}]   ;;  %s3043_s2 = inlined_call_operand.vmem [shape: bf16[128,20], index: 2, kind: input, shape index: {}]   ;;  %s3044_s3 = inlined_call_operand.vmem [shape: f32[128,1], index: 3, kind: input, shape index: {}]   ;;  %s3045_s4 = inlined_call_operand.vmem [shape: bf16[128,128], index: 4, kind: input, shape index: {}]   ;;  %s3046_s5 = inlined_call_operand.vmem [shape: f32[128,1], index: 5, kind: input, shape index: {}]   ;;  %s3047_s6 = inlined_call_operand.vmem [shape: f32[129,4], index: 6, kind: input, shape index: {}]   ;;  %s3048_s7 = inlined_call_operand.vmem [shape: f32[128,1], index: 7, kind: input, shape index: {}]   ;;  %s3049_s8 = inlined_call_operand.hbm [shape: f32[1,1024], index: 8, kind: output, shape index: {}]  }
   0x1   :  { %15 = vsyncpa [#allocation3 + $0x1], 0  ;;  %s2237_s27 = smov 0   ;;  %s2239_s28 = smov 0  }
   0x2   :  { %s2241_s29 = smov 0   ;;  %s2243_s30 = smov 0  }
   0x3 LB: > { %s1809_s9 = sadd.s32 4294967295, %s2187_s30   ;;  %s1810_s10 = sadd.s32 4294967294, %s2187_s30   ;;  %s2187_s30 = sphi %s2243_s30, %s3124_s30   ;;  %s2183_s29 = sphi %s2241_s29, %s3123_s29   ;;  %s2179_s28 = sphi %s2239_s28, %s3122_s28   ;;  %s2175_s27 = sphi %s2237_s27, %s3121_s27  }
   0x4   : > { %s2260_s11 = sadd.s32 1, %s2187_s30   ;;  %s206_s12 = sadd.s32 1, %s2183_s29 }
   0x5   : > { %s203_s13 = ssub.s32 %s2187_s30, %s2260_s11  ;;  %p216_p0 = scmp.ne.s32.totalorder %s2183_s29, %s2179_s28 }
   0x6   : > { %p204_p1 = scmp.eq.s32.totalorder %s203_s13, 0  ;;  %p217_p2 = scmp.eq.s32.totalorder %s1809_s9, 3 }
   0x7   : > { %p222_p3 = scmp.ne.s32.totalorder %s2179_s28, %s2175_s27  ;;  %p223_p4 = scmp.eq.s32.totalorder %s1810_s10, 3 }
   0x8   : > { %s2270_s14 = scalar_select %p204_p1, %s2183_s29, %s206_s12  }
   0x9   : > { %p2272_p5 = por %p217_p2, %p216_p0  ;;  %p2276_p6 = por %p223_p4, %p222_p3 }
   0xa   : > { %p1813_p7 = scmp.ge.s32.totalorder %s2187_s30, 1  ;;  %p277_p8 = scmp.lt.s32.totalorder %s2187_s30, 5 }
   0xc   : > { %p278_p9 = pnand %p1813_p7, %p277_p8 }
   0xe   : > { %281 = sbr.rel (%p278_p9) target bundleno = 727 (0x2d7), region = 52 }
  0x13   : > { %s2282_s17 = sshll.u32 %s1809_s9, 5  ;;  %v2288_v0 = vld [vmem:[%s3043_s2] sm:$0xff]   ;;  %vm594_vm0 = vcmask 162816   ;;  %v3050_v1 = vmov 0   ;;  %v392_v2 = vld [vmem:[%s3044_s3 + $0x70] sm:$0xff]  ;;  %v393_v3 = vld [vmem:[%s3044_s3 + $0x78] sm:$0xff] }
  0x14   : > { %p317_p10 = scmp.lt.s32.totalorder %s2282_s17, 127  ;;  %1930 = vmatprep.mubr.msk.bf16.mxu0 %vm594_vm0, %v2288_v0  ;;  %2093 = vset.pattern.permute.xlu0 %v3050_v1  ;;  %v390_v4 = vld [vmem:[%s3044_s3 + $0x60] sm:$0xff]  ;;  %v391_v13 = vld [vmem:[%s3044_s3 + $0x68] sm:$0xff]  ;;  %v388_v14 = vld [vmem:[%s3044_s3 + $0x50] sm:$0xff]  ;;  %vm1182_vm1 = vcmask 31744   ;;  %s1737_s25 = scalar_lea.hbm %s3049_s8, %s2282_s17 }
  0x15   : > { %2094 = vset.pattern.permute.xlu1 %v3050_v1  ;;  %1020 = vmatprep.mubr.bf16.mxu1 %v3050_v1  ;;  %v389_v17 = vld [vmem:[%s3044_s3 + $0x58] sm:$0xff]  ;;  %v386_v18 = vld [vmem:[%s3044_s3 + $0x40] sm:$0xff]  ;;  %v387_v20 = vld [vmem:[%s3044_s3 + $0x48] sm:$0xff]  ;;  %s2191_s12 = smov [#allocation2]  }
  0x16   : > { %s2291_s20 = scalar_select %p317_p10, %s2282_s17, 127  ;;  %466 = vperm.xlu0 %2093, %v392_v2   ;;  %456 = vperm.xlu1 %2094, %v390_v4   ;;  %v384_v21 = vld [vmem:[%s3044_s3 + $0x30] sm:$0xff]  ;;  %v385_v24 = vld [vmem:[%s3044_s3 + $0x38] sm:$0xff]  ;;  %v382_v25 = vld [vmem:[%s3044_s3 + $0x20] sm:$0xff] }
  0x17   : > { %v383_v27 = vld [vmem:[%s3044_s3 + $0x28] sm:$0xff]  ;;  %v380_v28 = vld [vmem:[%s3044_s3 + $0x10] sm:$0xff]  ;;  %v381_v30 = vld [vmem:[%s3044_s3 + $0x18] sm:$0xff]  ;;  %s2131_s13 = sshll.u32 %s2191_s12, 4  ;;  %s2132_s13 = int_to_ptr.vmem [resolvable:$false] %s2131_s13 }
  0x18   : > { %s1816_s21 = sshll.u32 %s2291_s20, 2  ;;  %v378_v32 = vld [vmem:[%s3044_s3] sm:$0xff]  ;;  %v379_v34 = vld [vmem:[%s3044_s3 + $0x8] sm:$0xff]  ;;  %v846_v39 = vld [vmem:[%s3046_s5 + $0x10] sm:$0xff]  ;;  %s1818_s18 = sshll.u32 %s2291_s20, 3 }
  0x19   : > { %s2308_s10 = scalar_lea.vmem %s3041_s0, %s1816_s21  ;;  %v844_v35 = vld [vmem:[%s3046_s5] sm:$0xff]  ;;  %v845_v38 = vld [vmem:[%s3046_s5 + $0x8] sm:$0xff]  ;;  %v847_v41 = vld [vmem:[%s3046_s5 + $0x18] sm:$0xff]  ;;  %s313_s21 = sand.u32 1, %s2179_s28  }
  0x1a   : > { %v2095_v5 = vld [vmem:[%s2308_s10 + $0x78] sm:$0xff]   ;;  %v2097_v7 = vld [vmem:[%s2308_s10 + $0x70] sm:$0xff]   ;;  %471 = vperm.xlu0 %2093, %v393_v3   ;;  %v2099_v11 = vld [vmem:[%s2308_s10 + $0x68] sm:$0xff]   ;;  %461 = vperm.xlu1 %2094, %v391_v13   ;;  %s1725_s26 = scalar_lea.sflag [#allocation3], %s313_s21 }
  0x1b   : > { %v2096_v6 = vld [vmem:[%s2308_s10 + $0x38] sm:$0xff]   ;;  %2044 = vmatprep.subr.msk.bf16.mxu0 %vm594_vm0, %v2095_v5  ;;  %v2098_v9 = vld [vmem:[%s2308_s10 + $0x30] sm:$0xff]   ;;  %v2100_v12 = vld [vmem:[%s2308_s10 + $0x28] sm:$0xff]  }
  0x1c   : > { %v641_v8 = vsel %vm594_vm0, %v2096_v6, 0  ;;  %v638_v10 = vsel %vm594_vm0, %v2098_v9, 0  ;;  %v635_v15 = vsel %vm594_vm0, %v2100_v12, 0  ;;  %v2101_v16 = vld [vmem:[%s2308_s10 + $0x60] sm:$0xff]   ;;  %v2103_v23 = vld [vmem:[%s2308_s10 + $0x58] sm:$0xff]   ;;  %v2105_v29 = vld [vmem:[%s2308_s10 + $0x50] sm:$0xff]  }
  0x1d   : > { %1915 = vmatpush3.bf16.xpose.msra.mxu0 %v641_v8  ;;  %v2102_v19 = vld [vmem:[%s2308_s10 + $0x20] sm:$0xff]   ;;  %v2104_v26 = vld [vmem:[%s2308_s10 + $0x18] sm:$0xff]   ;;  %v2106_v33 = vld [vmem:[%s2308_s10 + $0x10] sm:$0xff]  }
  0x1e   : > { %2045 = vmatprep.subr.msk.bf16.mxu0 %vm594_vm0, %v2097_v7  ;;  %446 = vperm.xlu0 %2093, %v388_v14   ;;  %v632_v22 = vsel %vm594_vm0, %v2102_v19, 0  ;;  %v629_v31 = vsel %vm594_vm0, %v2104_v26, 0  ;;  %v626_v36 = vsel %vm594_vm0, %v2106_v33, 0  ;;  %v2107_v37 = vld [vmem:[%s2308_s10 + $0x48] sm:$0xff]   ;;  %v848_v42 = vld [vmem:[%s3046_s5 + $0x20] sm:$0xff]  ;;  %v1531_v49 = vld [vmem:[%s3048_s7 + $0x10] sm:$0xff] }
  0x1f   : > { %451 = vperm.xlu1 %2094, %v389_v17   ;;  %v2108_v40 = vld [vmem:[%s2308_s10 + $0x8] sm:$0xff]   ;;  %v2109_v44 = vld [vmem:[%s2308_s10 + $0x40] sm:$0xff]   ;;  %v850_v51 = vld [vmem:[%s3046_s5 + $0x30] sm:$0xff] }
  0x20   : > { %v623_v43 = vsel %vm594_vm0, %v2108_v40, 0  ;;  %v1529_v45 = vld [vmem:[%s3048_s7] sm:$0xff]  ;;  %v1530_v46 = vld [vmem:[%s3048_s7 + $0x8] sm:$0xff]  ;;  %v1532_v52 = vld [vmem:[%s3048_s7 + $0x18] sm:$0xff] }
  0x21   : > { %v2110_v47 = vld [vmem:[%s2308_s10] sm:$0xff]   ;;  %v849_v48 = vld [vmem:[%s3046_s5 + $0x28] sm:$0xff]  ;;  %v851_v53 = vld [vmem:[%s3046_s5 + $0x38] sm:$0xff]  ;;  %s2521_s10 = scalar_lea.vmem %s3042_s1, %s1818_s18  ;;  %s2133_s18 = scalar_lea.vmem %s2132_s13, 64 }
  0x22   : > { %436 = vperm.xlu0 %2093, %v386_v18   ;;  %v620_v50 = vsel %vm594_vm0, %v2110_v47, 0  ;;  %v1533_v54 = vld [vmem:[%s3048_s7 + $0x20] sm:$0xff]  ;;  %v2112_v55 = vld [vmem:[%s3043_s2 + $0x8] sm:$0xff]   ;;  %v1535_v59 = vld [vmem:[%s3048_s7 + $0x30] sm:$0xff] }
  0x23   : > { %441 = vperm.xlu1 %2094, %v387_v20   ;;  %v852_v56 = vld [vmem:[%s3046_s5 + $0x40] sm:$0xff]  ;;  %v1534_v57 = vld [vmem:[%s3048_s7 + $0x28] sm:$0xff]  ;;  %v2113_v60 = vld [vmem:[%s3043_s2 + $0x10] sm:$0xff]  }
  0x24   : > { %v853_v58 = vld [vmem:[%s3046_s5 + $0x48] sm:$0xff]  ;;  %v854_v61 = vld [vmem:[%s3046_s5 + $0x50] sm:$0xff]  ;;  %v1536_v62 = vld [vmem:[%s3048_s7 + $0x38] sm:$0xff] }
  0x25   : > { %1917 = vmatpush3.bf16.xpose.msra.mxu0 %v638_v10  ;;  %v855_v63 = vld [vmem:[%s3046_s5 + $0x58] sm:$0xff]  ;;  %v856_v3 = vld [vmem:[%s3046_s5 + $0x60] sm:$0xff]  ;;  %v1538_v4 = vld [vmem:[%s3048_s7 + $0x48] sm:$0xff] }
  0x26   : > { %2046 = vmatprep.subr.msk.bf16.mxu0 %vm594_vm0, %v2099_v11  ;;  %426 = vperm.xlu0 %2093, %v384_v21   ;;  %v2114_v2 = vld [vmem:[%s3043_s2 + $0x18] sm:$0xff]   ;;  %v857_v5 = vld [vmem:[%s3046_s5 + $0x68] sm:$0xff]  ;;  %v1539_v6 = vld [vmem:[%s3048_s7 + $0x50] sm:$0xff] }
  0x27   : > { %431 = vperm.xlu1 %2094, %v385_v24   ;;  %v2115_v7 = vld [vmem:[%s3043_s2 + $0x20] sm:$0xff]   ;;  %v858_v8 = vld [vmem:[%s3046_s5 + $0x70] sm:$0xff]  ;;  %v1540_v9 = vld [vmem:[%s3048_s7 + $0x58] sm:$0xff] }
  0x28   : > { %v859_v10 = vld [vmem:[%s3046_s5 + $0x78] sm:$0xff]  ;;  %v1541_v11 = vld [vmem:[%s3048_s7 + $0x60] sm:$0xff]  ;;  %v2116_v12 = vld [vmem:[%s3043_s2 + $0x28] sm:$0xff]  }
  0x29   : > { %v1542_v13 = vld [vmem:[%s3048_s7 + $0x68] sm:$0xff]  ;;  %v1543_v14 = vld [vmem:[%s3048_s7 + $0x70] sm:$0xff]  ;;  %v2118_v17 = vld [vmem:[%s3043_s2 + $0x38] sm:$0xff]  }
  0x2a   : > { %416 = vperm.xlu0 %2093, %v382_v25   ;;  %v2524_v18 = vld [vmem:[%s2521_s10 + $0xf8] sm:$0xff]  ;;  %v2534_v20 = vld [vmem:[%s2521_s10 + $0xf0] sm:$0xff]  ;;  %v2554_v24 = vld [vmem:[%s2521_s10 + $0xe0] sm:$0xff] }
  0x2b   : > { %421 = vperm.xlu1 %2094, %v383_v27   ;;  %v2529_v19 = vld [vmem:[%s2521_s10 + $0x78] sm:$0xff]  ;;  %v2539_v21 = vld [vmem:[%s2521_s10 + $0x70] sm:$0xff]  ;;  %v2559_v25 = vld [vmem:[%s2521_s10 + $0x60] sm:$0xff] }
  0x2c   : > { %v2564_v26 = vld [vmem:[%s2521_s10 + $0xd8] sm:$0xff]  ;;  %v2599_v33 = vld [vmem:[%s2521_s10 + $0x40] sm:$0xff]  ;;  %v2663_v47 = vld [vmem:[%s2521_s10 + $0x10] sm:$0xff] }
  0x2d   : > { %1919 = vmatpush3.bf16.xpose.msra.mxu0 %v635_v15  ;;  %v1544_v15 = vld [vmem:[%s3048_s7 + $0x78] sm:$0xff]  ;;  %3081 = vst [vmem:[#allocation10_spill] sm:$0xff] %v2599_v33  ;;  %v2634_v40 = vld [vmem:[%s2521_s10 + $0xa0] sm:$0xff]  ;;  %3093 = vst [vmem:[#allocation22_spill] sm:$0xff] %v2663_v47 }
  0x2e   : > { %2047 = vmatprep.subr.msk.bf16.mxu0 %vm594_vm0, %v2101_v16  ;;  %406 = vperm.xlu0 %2093, %v380_v28   ;;  %v2117_v16 = vld [vmem:[%s3043_s2 + $0x30] sm:$0xff]   ;;  %v2569_v27 = vld [vmem:[%s2521_s10 + $0x58] sm:$0xff]  ;;  %3088 = vst [vmem:[#allocation17_spill] sm:$0xff] %v2634_v40 }
  0x2f   : > { %411 = vperm.xlu1 %2094, %v381_v30   ;;  %v2574_v28 = vld [vmem:[%s2521_s10 + $0xd0] sm:$0xff]  ;;  %v2584_v30 = vld [vmem:[%s2521_s10 + $0xc8] sm:$0xff] }
  0x30   : > { %3076 = vst [vmem:[#allocation5_spill] sm:$0xff] %v2574_v28  ;;  %3078 = vst [vmem:[#allocation7_spill] sm:$0xff] %v2584_v30 }
  0x32   : > { %396 = vperm.xlu0 %2093, %v378_v32   ;;  %v2594_v32 = vld [vmem:[%s2521_s10 + $0xc0] sm:$0xff] }
  0x33   : > { %401 = vperm.xlu1 %2094, %v379_v34   ;;  %3080 = vst [vmem:[#allocation9_spill] sm:$0xff] %v2594_v32  ;;  %v2604_v34 = vld [vmem:[%s2521_s10 + $0xb8] sm:$0xff] }
  0x34   : > { %3082 = vst [vmem:[#allocation11_spill] sm:$0xff] %v2604_v34 }
  0x35   : > { %1921 = vmatpush3.bf16.xpose.msra.mxu0 %v632_v22  ;;  %v2544_v22 = vld [vmem:[%s2521_s10 + $0xe8] sm:$0xff] }
  0x36   : > { %2048 = vmatprep.subr.msk.bf16.mxu0 %vm594_vm0, %v2103_v23  ;;  %862 = vperm.xlu0 %2093, %v844_v35   ;;  %v2549_v23 = vld [vmem:[%s2521_s10 + $0x68] sm:$0xff]  ;;  %v2609_v35 = vld [vmem:[%s2521_s10 + $0x38] sm:$0xff] }
  0x37   : > { %867 = vperm.xlu1 %2094, %v845_v38   ;;  %3083 = vst [vmem:[#allocation12_spill] sm:$0xff] %v2609_v35  ;;  %v2624_v38 = vld [vmem:[%s2521_s10 + $0xa8] sm:$0xff] }
  0x38   : > { %3086 = vst [vmem:[#allocation15_spill] sm:$0xff] %v2624_v38 }
  0x3a   : > { %872 = vperm.xlu0 %2093, %v846_v39   ;;  %v2629_v39 = vld [vmem:[%s2521_s10 + $0x28] sm:$0xff] }
  0x3b   : > { %877 = vperm.xlu1 %2094, %v847_v41   ;;  %3087 = vst [vmem:[#allocation16_spill] sm:$0xff] %v2629_v39  ;;  %v2639_v41 = vld [vmem:[%s2521_s10 + $0x20] sm:$0xff] }
  0x3c   : > { %3089 = vst [vmem:[#allocation18_spill] sm:$0xff] %v2639_v41 }
  0x3d   : > { %1923 = vmatpush3.bf16.xpose.msra.mxu0 %v629_v31  ;;  %v2589_v31 = vld [vmem:[%s2521_s10 + $0x48] sm:$0xff] }
  0x3e   : > { %2049 = vmatprep.subr.msk.bf16.mxu0 %vm594_vm0, %v2105_v29  ;;  %882 = vperm.xlu0 %2093, %v848_v42   ;;  %v2579_v29 = vld [vmem:[%s2521_s10 + $0x50] sm:$0xff]  ;;  %3079 = vst [vmem:[#allocation8_spill] sm:$0xff] %v2589_v31  ;;  %v2644_v42 = vld [vmem:[%s2521_s10 + $0x98] sm:$0xff] }
  0x3f   : > { %1547 = vperm.xlu1 %2094, %v1529_v45   ;;  %3077 = vst [vmem:[#allocation6_spill] sm:$0xff] %v2579_v29  ;;  %3090 = vst [vmem:[#allocation19_spill] sm:$0xff] %v2644_v42 }
  0x42   : > { %1552 = vperm.xlu0 %2093, %v1530_v46   ;;  %v2658_v46 = vld [vmem:[%s2521_s10 + $0x90] sm:$0xff] }
  0x43   : > { %887 = vperm.xlu1 %2094, %v849_v48   ;;  %3092 = vst [vmem:[#allocation21_spill] sm:$0xff] %v2658_v46 }
  0x45   : > { %1925 = vmatpush3.bf16.xpose.msra.mxu0 %v626_v36  ;;  %v2614_v36 = vld [vmem:[%s2521_s10 + $0xb0] sm:$0xff] }
  0x46   : > { %2050 = vmatprep.subr.msk.bf16.mxu0 %vm594_vm0, %v2107_v37  ;;  %1557 = vperm.xlu0 %2093, %v1531_v49   ;;  %3084 = vst [vmem:[#allocation13_spill] sm:$0xff] %v2614_v36  ;;  %v2619_v37 = vld [vmem:[%s2521_s10 + $0x30] sm:$0xff]  ;;  %v2670_v49 = vld [vmem:[%s2521_s10 + $0x88] sm:$0xff] }
  0x47   : > { %892 = vperm.xlu1 %2094, %v850_v51   ;;  %3085 = vst [vmem:[#allocation14_spill] sm:$0xff] %v2619_v37  ;;  %3094 = vst [vmem:[#allocation23_spill] sm:$0xff] %v2670_v49  ;;  %v2677_v51 = vld [vmem:[%s2521_s10 + $0x8] sm:$0xff] }
  0x48   : > { %3095 = vst [vmem:[#allocation24_spill] sm:$0xff] %v2677_v51 }
  0x4a   : > { %1562 = vperm.xlu0 %2093, %v1532_v52  }
  0x4b   : > { %897 = vperm.xlu1 %2094, %v851_v53   ;;  %v2684_v53 = vld [vmem:[%s2521_s10 + $0x80] sm:$0xff] }
  0x4c   : > { %3096 = vst [vmem:[#allocation25_spill] sm:$0xff] %v2684_v53 }
  0x4d   : > { %1927 = vmatpush3.bf16.xpose.msra.mxu0 %v623_v43 }
  0x4e   : > { %2051 = vmatprep.subr.msk.bf16.mxu0 %vm594_vm0, %v2109_v44  ;;  %1567 = vperm.xlu0 %2093, %v1533_v54   ;;  %v2651_v44 = vld [vmem:[%s2521_s10 + $0x18] sm:$0xff]  ;;  %v2689_v54 = vld [vmem:[%s2521_s10] sm:$0xff]  ;;  %s1814_s10 = sshll.u32 %s313_s21, 1 }
  0x4f   : > { %902 = vperm.xlu1 %2094, %v852_v56   ;;  %3091 = vst [vmem:[#allocation20_spill] sm:$0xff] %v2651_v44  ;;  %3097 = vst [vmem:[#allocation26_spill] sm:$0xff] %v2689_v54  ;;  %v1133_v56 = vld [vmem:[%s3047_s6] sm:$0xff]  ;;  %s315_s20 = scalar_lea.vmem [#allocation2], %s1814_s10 }
  0x50   : > { %s1739_s22 = sshll.u32 %s315_s20, 4  ;;  %s1740_s22 = int_to_ptr.vmem [resolvable:$true] %s1739_s22 }
  0x51   : > { %s2127_s9 = scalar_lea.vmem %s1740_s22, 32  ;;  %p2134_p0 = scmp.lt.s32.totalorder %s1740_s22, %s2132_s13 }
  0x52   : > { %1572 = vperm.xlu0 %2093, %v1534_v57   ;;  %p2128_p11 = scmp.ne.s32.totalorder %s1740_s22, %s2127_s9  ;;  %p2135_p1 = scmp.lt.s32.totalorder %s2133_s18, %s2127_s9 }
  0x53   : > { %907 = vperm.xlu1 %2094, %v853_v58   ;;  %v1134_v58 = vld [vmem:[%s3047_s6 + $0x8] sm:$0xff] }
  0x54   : > { %p2129_p12 = pnand %p2128_p11, %p2272_p5  ;;  %p2136_p2 = por %p2135_p1, %p2134_p0 }
  0x55   : > { %1929 = vmatpush3.bf16.xpose.msra.mxu0 %v620_v50 }
  0x56   : > { %1577 = vperm.xlu0 %2093, %v1535_v59   ;;  %1946 = vmatprep.subr.msk.mxu0 %vm1182_vm1, %v2524_v18  ;;  %p2130_p13 = pneg %p2129_p12 }
  0x57   : > { %912 = vperm.xlu1 %2094, %v854_v61  }
  0x58   : > { %p2137_p3 = pnand %p2136_p2, %p2130_p13 }
  0x5a   : > { %1582 = vperm.xlu0 %2093, %v1536_v62  }
  0x5b   : > { %917 = vperm.xlu1 %2094, %v855_v63   ;;  %v1136_v63 = vld [vmem:[%s3047_s6 + $0x18] sm:$0xff] }
  0x5c   : > { %1931 = vmatmul.mubr.msk.bf16.vlgmr.msra.gmra.mxu0 %vm594_vm0, %v2288_v0  ;;  %v1537_v0 = vld [vmem:[%s3048_s7 + $0x40] sm:$0xff] }
  0x5d   : > { %1932 = vmatprep.mubr.msk.bf16.mxu0 %vm594_vm0, %v2112_v55  ;;  %1947 = vmatpush3.xpose.msk.msra.mxu0 %vm1182_vm1, %v2529_v19 }
  0x5e   : > { %1587 = vperm.xlu0 %2093, %v1537_v0   ;;  %1948 = vmatprep.subr.msk.mxu0 %vm1182_vm1, %v2534_v20 }
  0x5f   : > { %922 = vperm.xlu1 %2094, %v856_v3  }
  0x61   : > { %1949 = vmatpush3.xpose.msk.msra.mxu0 %vm1182_vm1, %v2539_v21 }
  0x62   : > { %1592 = vperm.xlu0 %2093, %v1538_v4   ;;  %1950 = vmatprep.subr.msk.mxu0 %vm1182_vm1, %v2544_v22 }
  0x63   : > { %927 = vperm.xlu1 %2094, %v857_v5  }
  0x64   : > { %1933 = vmatmul.mubr.msk.bf16.gmra.mxu0 %vm594_vm0, %v2112_v55 }
  0x65   : > { %1934 = vmatprep.mubr.msk.bf16.mxu0 %vm594_vm0, %v2113_v60  ;;  %1951 = vmatpush3.xpose.msk.msra.mxu0 %vm1182_vm1, %v2549_v23 }
  0x66   : > { %1597 = vperm.xlu0 %2093, %v1539_v6   ;;  %1952 = vmatprep.subr.msk.mxu0 %vm1182_vm1, %v2554_v24 }
  0x67   : > { %932 = vperm.xlu1 %2094, %v858_v8  }
  0x69   : > { %1953 = vmatpush3.xpose.msk.msra.mxu0 %vm1182_vm1, %v2559_v25 }
  0x6a   : > { %1602 = vperm.xlu0 %2093, %v1540_v9   ;;  %1954 = vmatprep.subr.msk.mxu0 %vm1182_vm1, %v2564_v26 }
  0x6b   : > { %937 = vperm.xlu1 %2094, %v859_v10  }
  0x6c   : > { %1935 = vmatmul.mubr.msk.bf16.gmra.mxu0 %vm594_vm0, %v2113_v60  ;;  %v1135_v60 = vld [vmem:[%s3047_s6 + $0x10] sm:$0xff] }
  0x6d   : > { %1936 = vmatprep.mubr.msk.bf16.mxu0 %vm594_vm0, %v2114_v2  ;;  %1955 = vmatpush3.xpose.msk.msra.mxu0 %vm1182_vm1, %v2569_v27 }
  0x6e   : > { %1607 = vperm.xlu0 %2093, %v1541_v11   ;;  %1956 = vmatprep.subr.msk.mxu0 %vm1182_vm1, %v2574_v28 }
  0x6f   : > { %1612 = vperm.xlu1 %2094, %v1542_v13  }
  0x71   : > { %1957 = vmatpush3.xpose.msk.msra.mxu0 %vm1182_vm1, %v2579_v29 }
  0x72   : > { %1617 = vperm.xlu0 %2093, %v1543_v14   ;;  %1958 = vmatprep.subr.msk.mxu0 %vm1182_vm1, %v2584_v30 }
  0x73   : > { %1622 = vperm.xlu1 %2094, %v1544_v15  }
  0x74   : > { %1937 = vmatmul.mubr.msk.bf16.gmra.mxu0 %vm594_vm0, %v2114_v2 }
  0x75   : > { %1938 = vmatprep.mubr.msk.bf16.mxu0 %vm594_vm0, %v2115_v7  ;;  %1959 = vmatpush3.xpose.msk.msra.mxu0 %vm1182_vm1, %v2589_v31 }
  0x76   : > { %1960 = vmatprep.subr.msk.mxu0 %vm1182_vm1, %v2594_v32 }
  0x79   : > { %1961 = vmatpush3.xpose.msk.msra.mxu0 %vm1182_vm1, %v2599_v33 }
  0x7a   : > { %1962 = vmatprep.subr.msk.mxu0 %vm1182_vm1, %v2604_v34 }
  0x7c   : > { %1939 = vmatmul.mubr.msk.bf16.gmra.mxu0 %vm594_vm0, %v2115_v7 }
  0x7d   : > { %1940 = vmatprep.mubr.msk.bf16.mxu0 %vm594_vm0, %v2116_v12  ;;  %1963 = vmatpush3.xpose.msk.msra.mxu0 %vm1182_vm1, %v2609_v35 }
  0x7e   : > { %1964 = vmatprep.subr.msk.mxu0 %vm1182_vm1, %v2614_v36 }
  0x81   : > { %1965 = vmatpush3.xpose.msk.msra.mxu0 %vm1182_vm1, %v2619_v37 }
  0x82   : > { %1966 = vmatprep.subr.msk.mxu0 %vm1182_vm1, %v2624_v38 }
  0x84   : > { %1941 = vmatmul.mubr.msk.bf16.gmra.mxu0 %vm594_vm0, %v2116_v12 }
  0x85   : > { %1942 = vmatprep.mubr.msk.bf16.mxu0 %vm594_vm0, %v2117_v16  ;;  %1967 = vmatpush3.xpose.msk.msra.mxu0 %vm1182_vm1, %v2629_v39 }
  0x86   : > { %1968 = vmatprep.subr.msk.mxu0 %vm1182_vm1, %v2634_v40 }
  0x89   : > { %1969 = vmatpush3.xpose.msk.msra.mxu0 %vm1182_vm1, %v2639_v41 }
  0x8a   : > { %1970 = vmatprep.subr.msk.mxu0 %vm1182_vm1, %v2644_v42 }
  0x8c   : > { %1943 = vmatmul.mubr.msk.bf16.gmra.mxu0 %vm594_vm0, %v2117_v16 }
  0x8d   : > { %1944 = vmatprep.mubr.msk.bf16.mxu0 %vm594_vm0, %v2118_v17  ;;  %1971 = vmatpush3.xpose.msk.msra.mxu0 %vm1182_vm1, %v2651_v44 }
  0x8e   : > { %1972 = vmatprep.subr.msk.mxu0 %vm1182_vm1, %v2658_v46 }
  0x91   : > { %v2646_v43 = vpop.permute.xlu0 %466  ;;  %v2653_v45 = vpop.permute.xlu1 %456  ;;  %1973 = vmatpush3.xpose.msk.msra.mxu0 %vm1182_vm1, %v2663_v47 }
  0x92   : > { %1974 = vmatprep.subr.msk.mxu0 %vm1182_vm1, %v2670_v49 }
  0x94   : > { %1945 = vmatmul.mubr.msk.bf16.gmra.mxu0 %vm594_vm0, %v2118_v17 }
  0x95   : > { %v2665_v48 = vpop.permute.xlu0 %471  ;;  %v2672_v50 = vpop.permute.xlu1 %461  ;;  %1975 = vmatpush3.xpose.msk.msra.mxu0 %vm1182_vm1, %v2677_v51  ;;  %1978 = vmatprep.mubr.msk.f32.mxu0 %vm1182_vm1, %v1133_v56 }
  0x96   : > { %1976 = vmatprep.subr.msk.mxu0 %vm1182_vm1, %v2684_v53 }
  0x99   : > { %v2681_v52 = vpop.permute.xlu0 %446  ;;  %1977 = vmatpush3.xpose.msk.msra.mxu0 %vm1182_vm1, %v2689_v54 }
  0x9a   : > { %v2691_v55 = vpop.permute.xlu1 %451 }
  0x9c   : > { %1979 = vmatmul.mubr.msk.f32.vlgmr.msra.gmra.mxu0 %vm1182_vm1, %v1133_v56 }
  0x9d   : > { %v2700_v57 = vpop.permute.xlu0 %436  ;;  %1980 = vmatprep.mubr.msk.f32.mxu0 %vm1182_vm1, %v1134_v58 }
  0x9e   : > { %v2706_v59 = vpop.permute.xlu1 %441 }
  0xa0   : > { %1981 = vmatmul.mubr.msk.f32.gmra.mxu0 %vm1182_vm1, %v1134_v58 }
  0xa1   : > { %1982 = vmatprep.mubr.msk.f32.mxu0 %vm1182_vm1, %v1135_v60  ;;  %v2713_v61 = vpop.permute.xlu0 %426 }
  0xa2   : > { %v2716_v62 = vpop.permute.xlu1 %431 }
  0xa4   : > { %1983 = vmatmul.mubr.msk.f32.gmra.mxu0 %vm1182_vm1, %v1135_v60 }
  0xa5   : > { %1984 = vmatprep.mubr.msk.f32.mxu0 %vm1182_vm1, %v1136_v63  ;;  %v2723_v0 = vpop.permute.xlu0 %416 }
  0xa6   : > { %v2725_v2 = vpop.permute.xlu1 %421 }
  0xa8   : > { %1985 = vmatmul.mubr.msk.f32.gmra.mxu0 %vm1182_vm1, %v1136_v63 }
  0xa9   : > { %v407_v3 = vpop.permute.xlu0 %406 }
  0xaa   : > { %v412_v4 = vpop.permute.xlu1 %411 }
  0xad   : > { %v397_v6 = vpop.permute.xlu0 %396 }
  0xae   : > { %v402_v9 = vpop.permute.xlu1 %401 }
 0x11c   : > { %v701_v5 = vpop.f32.mrf.mxu0 }
 0x11d   : > { %v702_v8 = vadd.f32 %v701_v5, %v397_v6 }
 0x11e   : > { %v703_v7 = vpop.f32.mrf.mxu0 }
 0x11f   : > { %v704_v11 = vadd.f32 %v703_v7, %v397_v6  ;;  %v780_v14 = vmax.f32 %v702_v8, 0.0 }
 0x120   : > { %v705_v10 = vpop.f32.mrf.mxu0 }
 0x121   : > { %v706_v12 = vadd.f32 %v705_v10, %v402_v9  ;;  %v781_v56 = vmax.f32 %v704_v11, 0.0 }
 0x122   : > { %v707_v13 = vpop.f32.mrf.mxu0 }
 0x123   : > { %v782_v15 = vmax.f32 %v706_v12, 0.0  ;;  %v708_v16 = vadd.f32 %v707_v13, %v402_v9 }
 0x124   : > { %v711_v17 = vpop.f32.mrf.mxu0 }
 0x125   : > { %v2727_v58 = vpack.c.bf16 %v782_v15, %v780_v14  ;;  %v783_v60 = vmax.f32 %v708_v16, 0.0  ;;  %v712_v54 = vadd.f32 %v711_v17, %v407_v3 }
 0x126   : > { %v713_v63 = vpop.f32.mrf.mxu0 }
 0x127   : > { %v2729_v1 = vpack.c.bf16 %v783_v60, %v781_v56  ;;  %v714_v51 = vadd.f32 %v713_v63, %v407_v3  ;;  %v784_v47 = vmax.f32 %v712_v54, 0.0 }
 0x128   : > { %v715_v53 = vpop.f32.mrf.mxu0 }
 0x129   : > { %v716_v5 = vadd.f32 %v715_v53, %v412_v4  ;;  %v785_v8 = vmax.f32 %v714_v51, 0.0 }
 0x12a   : > { %v717_v49 = vpop.f32.mrf.mxu0 }
 0x12b   : > { %v786_v6 = vmax.f32 %v716_v5, 0.0  ;;  %v718_v7 = vadd.f32 %v717_v49, %v412_v4 }
 0x12c   : > { %v2731_v10 = vpop.f32.mrf.mxu0 }
 0x12d   : > { %v2733_v9 = vpack.c.bf16 %v786_v6, %v784_v47  ;;  %v787_v11 = vmax.f32 %v718_v7, 0.0 }
 0x12e   : > { %v2735_v12 = vpop.f32.mrf.mxu0 }
 0x12f   : > { %v2737_v13 = vpack.c.bf16 %v787_v11, %v785_v8 }
 0x130   : > { %v2739_v14 = vpop.f32.mrf.mxu0 }
 0x132   : > { %v2741_v15 = vpop.f32.mrf.mxu0 }
 0x134   : > { %v2743_v3 = vpop.f32.mrf.mxu0 }
 0x136   : > { %v733_v53 = vpop.f32.mrf.mxu0 }
 0x138   : > { %v735_v54 = vpop.f32.mrf.mxu0 }
 0x13a   : > { %v737_v16 = vpop.f32.mrf.mxu0 }
 0x13c   : > { %v741_v49 = vpop.f32.mrf.mxu0 }
 0x13e   : > { %v743_v4 = vpop.f32.mrf.mxu0 }
 0x140   : > { %v745_v17 = vpop.f32.mrf.mxu0 }
 0x142   : > { %v747_v51 = vpop.f32.mrf.mxu0 }
 0x144   : > { %v751_v47 = vpop.f32.mrf.mxu0 }
 0x146   : > { %v753_v56 = vpop.f32.mrf.mxu0 }
 0x148   : > { %v755_v60 = vpop.f32.mrf.mxu0 }
 0x14a   : > { %v757_v63 = vpop.f32.mrf.mxu0 }
 0x14b   : > { %v758_v33 = vadd.f32 %v757_v63, %v2691_v55 }
 0x14c   : > { %v761_v5 = vpop.f32.mrf.mxu0 }
 0x14e   : > { %v763_v6 = vpop.f32.mrf.mxu0 }
 0x14f   : > { %v764_v37 = vadd.f32 %v763_v6, %v2653_v45 }
 0x150   : > { %v765_v7 = vpop.f32.mrf.mxu0 }
 0x151   : > { %v766_v35 = vadd.f32 %v765_v7, %v2672_v50  ;;  %v805_v29 = vmax.f32 %v764_v37, 0.0  ;;  %v746_v37 = vadd.f32 %v745_v17, %v2706_v59 }
 0x152   : > { %v767_v8 = vpop.f32.mrf.mxu0 }
 0x153   : > { %v768_v42 = vadd.f32 %v767_v8, %v2672_v50  ;;  %v762_v8 = vadd.f32 %v761_v5, %v2653_v45  ;;  %v806_v6 = vmax.f32 %v766_v35, 0.0  ;;  %v738_v35 = vadd.f32 %v737_v16, %v2716_v62 }
 0x154   : > { %v771_v11 = vpop.f32.mrf.mxu0  ;;  %v732_v16 = vadd.f32 %v2743_v3, %v2713_v61 }
 0x155   : > { %v772_v39 = vadd.f32 %v771_v11, %v2646_v43  ;;  %v807_v32 = vmax.f32 %v768_v42, 0.0  ;;  %v756_v11 = vadd.f32 %v755_v60, %v2691_v55  ;;  %v752_v42 = vadd.f32 %v751_v47, %v2681_v52 }
 0x156   : > { %v773_v46 = vpop.f32.mrf.mxu0  ;;  %v792_v60 = vmax.f32 %v732_v16, 0.0 }
 0x157   : > { %v774_v41 = vadd.f32 %v773_v46, %v2646_v43  ;;  %v808_v46 = vmax.f32 %v772_v39, 0.0 }
 0x158   : > { %v775_v44 = vpop.f32.mrf.mxu0 }
 0x159   : > { %v776_v40 = vadd.f32 %v775_v44, %v2665_v48  ;;  %v809_v31 = vmax.f32 %v774_v41, 0.0  ;;  %v754_v44 = vadd.f32 %v753_v56, %v2681_v52  ;;  %v804_v41 = vmax.f32 %v762_v8, 0.0  ;;  %v3110_v8 = vld [vmem:[#allocation16_spill] sm:$0xff] }
 0x15a   : > { %v777_v38 = vpop.f32.mrf.mxu0  ;;  %v798_v52 = vmax.f32 %v746_v37, 0.0  ;;  %v3120_v37 = vld [vmem:[#allocation26_spill] sm:$0xff] }
 0x15b   : > { %v778_v36 = vadd.f32 %v777_v38, %v2665_v48  ;;  %v810_v34 = vmax.f32 %v776_v40, 0.0  ;;  %v748_v38 = vadd.f32 %v747_v51, %v2706_v59  ;;  %v803_v48 = vmax.f32 %v758_v33, 0.0 }
 0x15c   : > { %v825_v40 = vpack.c.bf16 %v807_v32, %v805_v29  ;;  %v801_v39 = vmax.f32 %v754_v44, 0.0  ;;  %v742_v33 = vadd.f32 %v741_v49, %v2700_v57  ;;  %v800_v29 = vmax.f32 %v752_v42, 0.0  ;;  %v2125_v44 = vld [vmem:[%s3045_s4 + $0x30] sm:$0xff]  }
 0x15d   : > { %v811_v30 = vmax.f32 %v778_v36, 0.0  ;;  %v826_v28 = vpack.c.bf16 %v810_v34, %v808_v46  ;;  %v744_v36 = vadd.f32 %v743_v4, %v2700_v57  ;;  %v799_v34 = vmax.f32 %v748_v38, 0.0  ;;  %v3111_v46 = vld [vmem:[#allocation17_spill] sm:$0xff]  ;;  %v3117_v42 = vld [vmem:[#allocation23_spill] sm:$0xff] }
 0x15e   : > { %v823_v45 = vpack.c.bf16 %v803_v48, %v801_v39  ;;  %v734_v32 = vadd.f32 %v733_v53, %v2713_v61  ;;  %v728_v59 = vadd.f32 %v2741_v15, %v2725_v2  ;;  %v795_v4 = vmax.f32 %v738_v35, 0.0  ;;  %v3115_v38 = vld [vmem:[#allocation21_spill] sm:$0xff]  ;;  %v2126_v48 = vld [vmem:[%s3045_s4 + $0x38] sm:$0xff]  }
 0x15f   : > { %v827_v43 = vpack.c.bf16 %v811_v30, %v809_v31  ;;  %v802_v30 = vmax.f32 %v756_v11, 0.0  ;;  %v824_v31 = vpack.c.bf16 %v806_v6, %v804_v41  ;;  %v797_v50 = vmax.f32 %v744_v36, 0.0  ;;  %v3113_v11 = vld [vmem:[#allocation19_spill] sm:$0xff]  ;;  %v3114_v6 = vld [vmem:[#allocation20_spill] sm:$0xff]  ;;  %v3119_v39 = vld [vmem:[#allocation25_spill] sm:$0xff] }
 0x160   : > { %v796_v51 = vmax.f32 %v742_v33, 0.0  ;;  %v724_v57 = vadd.f32 %v2735_v12, %v2723_v0  ;;  %v793_v53 = vmax.f32 %v734_v32, 0.0  ;;  %v791_v47 = vmax.f32 %v728_v59, 0.0  ;;  %v1137_v41 = vld [vmem:[%s3047_s6 + $0x20] sm:$0xff]  ;;  %v1140_v35 = vld [vmem:[%s3047_s6 + $0x38] sm:$0xff]  ;;  %v1143_v33 = vld [vmem:[%s3047_s6 + $0x50] sm:$0xff]  ;;  %v863_v59 = vpop.permute.xlu0 %862 }
 0x161   : > { %988 = vmatprep.subr.bf16.mxu1 %v827_v43  ;;  %v822_v55 = vpack.c.bf16 %v802_v30, %v800_v29  ;;  %v821_v17 = vpack.c.bf16 %v799_v34, %v797_v50  ;;  %v722_v15 = vadd.f32 %v2731_v10, %v2723_v0  ;;  %v2119_v0 = vld [vmem:[%s3045_s4] sm:$0xff]   ;;  %v3112_v43 = vld [vmem:[#allocation18_spill] sm:$0xff]  ;;  %v1144_v29 = vld [vmem:[%s3047_s6 + $0x58] sm:$0xff] }
 0x162   : > { %989 = vmatpush1.bf16.msra.mxu1 %v826_v28  ;;  %v736_v28 = vadd.f32 %v735_v54, %v2716_v62  ;;  %v726_v62 = vadd.f32 %v2739_v14, %v2725_v2  ;;  %v820_v49 = vpack.c.bf16 %v798_v52, %v796_v51  ;;  %v819_v56 = vpack.c.bf16 %v795_v4, %v793_v53  ;;  %v3107_v10 = vld [vmem:[#allocation13_spill] sm:$0xff]  ;;  %v3109_v14 = vld [vmem:[#allocation15_spill] sm:$0xff]  ;;  %v3118_v36 = vld [vmem:[#allocation24_spill] sm:$0xff]  ;;  %v1396_v4 = vpop.f32.mrf.mxu0  ;;  %v868_v51 = vpop.permute.xlu1 %867 }
 0x163   : > { %990 = vmatprep.subr.bf16.mxu1 %v825_v40  ;;  %v789_v61 = vmax.f32 %v724_v57, 0.0  ;;  %v788_v12 = vmax.f32 %v722_v15, 0.0  ;;  %v3098_v2 = vmov 0   ;;  %v3116_v40 = vld [vmem:[#allocation22_spill] sm:$0xff]  ;;  %v1141_v34 = vld [vmem:[%s3047_s6 + $0x40] sm:$0xff]  ;;  %v1148_v52 = vld [vmem:[%s3047_s6 + $0x78] sm:$0xff] }
 0x164   : > { %v794_v54 = vmax.f32 %v736_v28, 0.0  ;;  %v790_v3 = vmax.f32 %v726_v62, 0.0  ;;  %v1138_v30 = vld [vmem:[%s3047_s6 + $0x28] sm:$0xff]  ;;  %v1145_v32 = vld [vmem:[%s3047_s6 + $0x60] sm:$0xff]  ;;  %v1147_v28 = vld [vmem:[%s3047_s6 + $0x70] sm:$0xff]  ;;  %v873_v16 = vpop.permute.xlu0 %872 }
 0x165   : > { %v817_v5 = vpack.c.bf16 %v791_v47, %v789_v61  ;;  %v1146_v50 = vld [vmem:[%s3047_s6 + $0x68] sm:$0xff] }
 0x166   : > { %991 = vmatpush1.bf16.msra.mxu1 %v824_v31  ;;  %v818_v63 = vpack.c.bf16 %v794_v54, %v792_v60  ;;  %v816_v7 = vpack.c.bf16 %v790_v3, %v788_v12  ;;  %v1139_v31 = vld [vmem:[%s3047_s6 + $0x30] sm:$0xff] }
 0x167   : > { %992 = vmatprep.subr.bf16.mxu1 %v823_v45  ;;  %v1142_v45 = vld [vmem:[%s3047_s6 + $0x48] sm:$0xff] }
 0x168   : > { %v2938_v53 = vpop.permute.xlu0 %882 }
 0x16a   : > { %993 = vmatpush1.bf16.msra.mxu1 %v822_v55  ;;  %v1149_v55 = vld [vmem:[%s3047_s6 + $0x80] sm:$0x1] }
 0x16b   : > { %994 = vmatprep.subr.bf16.mxu1 %v821_v17  ;;  %v1398_v17 = vpop.f32.mrf.mxu0 }
 0x16c   : > { %v1553_v12 = vpop.permute.xlu0 %1552 }
 0x16d   : > { %v1402_v57 = vpop.f32.mrf.mxu0 }
 0x16e   : > { %995 = vmatpush1.bf16.msra.mxu1 %v820_v49 }
 0x16f   : > { %996 = vmatprep.subr.bf16.mxu1 %v819_v56  ;;  %v1404_v49 = vpop.f32.mrf.mxu0  ;;  %v878_v56 = vpop.permute.xlu1 %877 }
 0x172   : > { %997 = vmatpush1.bf16.msra.mxu1 %v818_v63 }
 0x173   : > { %998 = vmatprep.subr.bf16.mxu1 %v817_v5  ;;  %v1408_v5 = vpop.f32.mrf.mxu0 }
 0x176   : > { %999 = vmatpush1.bf16.msra.mxu1 %v816_v7 }
 0x177   : > { %1000 = vmatprep.subr.bf16.mxu1 %v2737_v13  ;;  %v3108_v13 = vld [vmem:[#allocation14_spill] sm:$0xff] }
 0x17a   : > { %1001 = vmatpush1.bf16.msra.mxu1 %v2733_v9  ;;  %v2124_v9 = vld [vmem:[%s3045_s4 + $0x28] sm:$0xff]  }
 0x17b   : > { %1002 = vmatprep.subr.bf16.mxu1 %v2729_v1  ;;  %v2120_v1 = vld [vmem:[%s3045_s4 + $0x8] sm:$0xff]  }
 0x17e   : > { %1003 = vmatpush1.bf16.msra.mxu1 %v2727_v58  ;;  %v3106_v58 = vld [vmem:[#allocation12_spill] sm:$0xff] }
 0x17f   : > { %2012 = vmatprep.subr.msk.mxu1 %vm1182_vm1, %v2524_v18  ;;  %v2121_v18 = vld [vmem:[%s3045_s4 + $0x10] sm:$0xff]  }
 0x181   : > { %1021 = vmatmul.mubr.bf16.vlgmr.msra.gmra.mxu1 %v2119_v0 }
 0x182   : > { %2028 = vmatpush3.xpose.msk.msra.mxu1 %vm1182_vm1, %v2529_v19  ;;  %1030 = vmatprep.mubr.bf16.mxu1 %v3098_v2  ;;  %v3099_v19 = vld [vmem:[#allocation5_spill] sm:$0xff] }
 0x183   : > { %2013 = vmatprep.subr.msk.mxu1 %vm1182_vm1, %v2534_v20  ;;  %v2122_v20 = vld [vmem:[%s3045_s4 + $0x18] sm:$0xff]  }
 0x186   : > { %2029 = vmatpush3.xpose.msk.msra.mxu1 %vm1182_vm1, %v2539_v21  ;;  %v3100_v21 = vld [vmem:[#allocation6_spill] sm:$0xff] }
 0x187   : > { %2014 = vmatprep.subr.msk.mxu1 %vm1182_vm1, %v2544_v22  ;;  %v3101_v22 = vld [vmem:[#allocation7_spill] sm:$0xff] }
 0x189   : > { %1031 = vmatmul.mubr.bf16.gmra.mxu1 %v2120_v1 }
 0x18a   : > { %2030 = vmatpush3.xpose.msk.msra.mxu1 %vm1182_vm1, %v2549_v23  ;;  %1040 = vmatprep.mubr.bf16.mxu1 %v3098_v2  ;;  %v3102_v23 = vld [vmem:[#allocation8_spill] sm:$0xff] }
 0x18b   : > { %2015 = vmatprep.subr.msk.mxu1 %vm1182_vm1, %v2554_v24  ;;  %v3103_v24 = vld [vmem:[#allocation9_spill] sm:$0xff] }
 0x18e   : > { %2031 = vmatpush3.xpose.msk.msra.mxu1 %vm1182_vm1, %v2559_v25  ;;  %v2123_v25 = vld [vmem:[%s3045_s4 + $0x20] sm:$0xff]  }
 0x18f   : > { %2016 = vmatprep.subr.msk.mxu1 %vm1182_vm1, %v2564_v26  ;;  %v3104_v26 = vld [vmem:[#allocation10_spill] sm:$0xff] }
 0x191   : > { %1041 = vmatmul.mubr.bf16.gmra.mxu1 %v2121_v18 }
 0x192   : > { %2032 = vmatpush3.xpose.msk.msra.mxu1 %vm1182_vm1, %v2569_v27  ;;  %1050 = vmatprep.mubr.bf16.mxu1 %v3098_v2  ;;  %v3105_v27 = vld [vmem:[#allocation11_spill] sm:$0xff] }
 0x193   : > { %2017 = vmatprep.subr.msk.mxu1 %vm1182_vm1, %v3099_v19 }
 0x196   : > { %2033 = vmatpush3.xpose.msk.msra.mxu1 %vm1182_vm1, %v3100_v21 }
 0x197   : > { %2018 = vmatprep.subr.msk.mxu1 %vm1182_vm1, %v3101_v22 }
 0x199   : > { %1051 = vmatmul.mubr.bf16.gmra.mxu1 %v2122_v20  ;;  %v1548_v20 = vpop.permute.xlu1 %1547 }
 0x19a   : > { %2034 = vmatpush3.xpose.msk.msra.mxu1 %vm1182_vm1, %v3102_v23  ;;  %1060 = vmatprep.mubr.bf16.mxu1 %v3098_v2 }
 0x19b   : > { %2019 = vmatprep.subr.msk.mxu1 %vm1182_vm1, %v3103_v24  ;;  %v1410_v24 = vpop.f32.mrf.mxu0 }
 0x19e   : > { %2035 = vmatpush3.xpose.msk.msra.mxu1 %vm1182_vm1, %v3104_v26 }
 0x19f   : > { %2020 = vmatprep.subr.msk.mxu1 %vm1182_vm1, %v3105_v27 }
 0x1a1   : > { %1061 = vmatmul.mubr.bf16.gmra.mxu1 %v2123_v25 }
 0x1a2   : > { %2036 = vmatpush3.xpose.msk.msra.mxu1 %vm1182_vm1, %v3106_v58  ;;  %1070 = vmatprep.mubr.bf16.mxu1 %v3098_v2 }
 0x1a3   : > { %2021 = vmatprep.subr.msk.mxu1 %vm1182_vm1, %v3107_v10 }
 0x1a6   : > { %2037 = vmatpush3.xpose.msk.msra.mxu1 %vm1182_vm1, %v3108_v13  ;;  %v1558_v13 = vpop.permute.xlu0 %1557 }
 0x1a7   : > { %2022 = vmatprep.subr.msk.mxu1 %vm1182_vm1, %v3109_v14 }
 0x1a9   : > { %1071 = vmatmul.mubr.bf16.gmra.mxu1 %v2124_v9 }
 0x1aa   : > { %2038 = vmatpush3.xpose.msk.msra.mxu1 %vm1182_vm1, %v3110_v8  ;;  %1080 = vmatprep.mubr.bf16.mxu1 %v3098_v2 }
 0x1ab   : > { %2023 = vmatprep.subr.msk.mxu1 %vm1182_vm1, %v3111_v46 }
 0x1ae   : > { %2039 = vmatpush3.xpose.msk.msra.mxu1 %vm1182_vm1, %v3112_v43 }
 0x1af   : > { %2024 = vmatprep.subr.msk.mxu1 %vm1182_vm1, %v3113_v11 }
 0x1b1   : > { %1081 = vmatmul.mubr.bf16.gmra.mxu1 %v2125_v44 }
 0x1b2   : > { %2040 = vmatpush3.xpose.msk.msra.mxu1 %vm1182_vm1, %v3114_v6  ;;  %1090 = vmatprep.mubr.bf16.mxu1 %v3098_v2  ;;  %v1414_v6 = vpop.f32.mrf.mxu0 }
 0x1b3   : > { %2025 = vmatprep.subr.msk.mxu1 %vm1182_vm1, %v3115_v38 }
 0x1b6   : > { %2041 = vmatpush3.xpose.msk.msra.mxu1 %vm1182_vm1, %v3116_v40 }
 0x1b7   : > { %2026 = vmatprep.subr.msk.mxu1 %vm1182_vm1, %v3117_v42 }
 0x1b9   : > { %1091 = vmatmul.mubr.bf16.gmra.mxu1 %v2126_v48 }
 0x1ba   : > { %2042 = vmatpush3.xpose.msk.msra.mxu1 %vm1182_vm1, %v3118_v36  ;;  %1986 = vmatprep.mubr.msk.f32.mxu1 %vm1182_vm1, %v1137_v41 }
 0x1bb   : > { %2027 = vmatprep.subr.msk.mxu1 %vm1182_vm1, %v3119_v39 }
 0x1be   : > { %2043 = vmatpush3.xpose.msk.msra.mxu1 %vm1182_vm1, %v3120_v37 }
 0x1c1   : > { %1987 = vmatmul.mubr.msk.f32.vlgmr.msra.gmra.mxu1 %vm1182_vm1, %v1137_v41 }
 0x1c2   : > { %1988 = vmatprep.mubr.msk.f32.mxu1 %vm1182_vm1, %v1138_v30 }
 0x1c5   : > { %1989 = vmatmul.mubr.msk.f32.gmra.mxu1 %vm1182_vm1, %v1138_v30 }
 0x1c6   : > { %1990 = vmatprep.mubr.msk.f32.mxu1 %vm1182_vm1, %v1139_v31 }
 0x1c9   : > { %1991 = vmatmul.mubr.msk.f32.gmra.mxu1 %vm1182_vm1, %v1139_v31 }
 0x1ca   : > { %1992 = vmatprep.mubr.msk.f32.mxu1 %vm1182_vm1, %v1140_v35 }
 0x1cd   : > { %1993 = vmatmul.mubr.msk.f32.gmra.mxu1 %vm1182_vm1, %v1140_v35 }
 0x1ce   : > { %1994 = vmatprep.mubr.msk.f32.mxu1 %vm1182_vm1, %v1141_v34 }
 0x1d1   : > { %1995 = vmatmul.mubr.msk.f32.gmra.mxu1 %vm1182_vm1, %v1141_v34  ;;  %v1416_v34 = vpop.f32.mrf.mxu0 }
 0x1d2   : > { %1996 = vmatprep.mubr.msk.f32.mxu1 %vm1182_vm1, %v1142_v45 }
 0x1d5   : > { %1997 = vmatmul.mubr.msk.f32.gmra.mxu1 %vm1182_vm1, %v1142_v45  ;;  %v1563_v45 = vpop.permute.xlu0 %1562 }
 0x1d6   : > { %1998 = vmatprep.mubr.msk.f32.mxu1 %vm1182_vm1, %v1143_v33 }
 0x1d9   : > { %1999 = vmatmul.mubr.msk.f32.gmra.mxu1 %vm1182_vm1, %v1143_v33 }
 0x1da   : > { %2000 = vmatprep.mubr.msk.f32.mxu1 %vm1182_vm1, %v1144_v29 }
 0x1dd   : > { %2001 = vmatmul.mubr.msk.f32.gmra.mxu1 %vm1182_vm1, %v1144_v29 }
 0x1de   : > { %2002 = vmatprep.mubr.msk.f32.mxu1 %vm1182_vm1, %v1145_v32 }
 0x1e1   : > { %2003 = vmatmul.mubr.msk.f32.gmra.mxu1 %vm1182_vm1, %v1145_v32 }
 0x1e2   : > { %2004 = vmatprep.mubr.msk.f32.mxu1 %vm1182_vm1, %v1146_v50 }
 0x1e5   : > { %2005 = vmatmul.mubr.msk.f32.gmra.mxu1 %vm1182_vm1, %v1146_v50 }
 0x1e6   : > { %2006 = vmatprep.mubr.msk.f32.mxu1 %vm1182_vm1, %v1147_v28 }
 0x1e9   : > { %2007 = vmatmul.mubr.msk.f32.gmra.mxu1 %vm1182_vm1, %v1147_v28 }
 0x1ea   : > { %2008 = vmatprep.mubr.msk.f32.mxu1 %vm1182_vm1, %v1148_v52 }
 0x1ed   : > { %2009 = vmatmul.mubr.msk.f32.gmra.mxu1 %vm1182_vm1, %v1148_v52 }
 0x1ee   : > { %2010 = vmatprep.mubr.msk.f32.mxu1 %vm1182_vm1, %v1149_v55 }
 0x1f1   : > { %2011 = vmatmul.mubr.msk.f32.gmra.mxu1 %vm1182_vm1, %v1149_v55 }
 0x241   : > { %v1022_v62 = vpop.f32.mrf.mxu1 }
 0x242   : > { %v1023_v54 = vadd.f32 %v1022_v62, %v863_v59 }
 0x243   : > { %v1024_v47 = vpop.f32.mrf.mxu1 }
 0x244   : > { %v1101_v15 = vmax.f32 %v1023_v54, 0.0  ;;  %v1025_v60 = vadd.f32 %v1024_v47, %v863_v59 }
 0x245   : > { %v1026_v61 = vpop.f32.mrf.mxu1 }
 0x246   : > { %v1102_v3 = vmax.f32 %v1025_v60, 0.0  ;;  %v1027_v63 = vadd.f32 %v1026_v61, %v868_v51  ;;  %v1497_v7 = vmul.f32 %v1396_v4, %v1101_v15 }
 0x247   : > { %v1028_v0 = vpop.f32.mrf.mxu1 }
 0x248   : > { %v1103_v2 = vmax.f32 %v1027_v63, 0.0  ;;  %v1029_v1 = vadd.f32 %v1028_v0, %v868_v51  ;;  %v1498_v18 = vmul.f32 %v1398_v17, %v1102_v3  ;;  %v1625_v25 = vmul.f32 %v1548_v20, %v1497_v7 }
 0x249   : > { %v1032_v19 = vpop.f32.mrf.mxu1 }
 0x24a   : > { %v1104_v21 = vmax.f32 %v1029_v1, 0.0  ;;  %v1033_v22 = vadd.f32 %v1032_v19, %v873_v16  ;;  %v1499_v23 = vmul.f32 %v1402_v57, %v1103_v2  ;;  %v1626_v14 = vmul.f32 %v1548_v20, %v1498_v18  ;;  %v1568_v2 = vpop.permute.xlu0 %1567 }
 0x24b   : > { %v1034_v26 = vpop.f32.mrf.mxu1 }
 0x24c   : > { %v1105_v27 = vmax.f32 %v1033_v22, 0.0  ;;  %v1627_v58 = vmul.f32 %v1553_v12, %v1499_v23  ;;  %v1035_v10 = vadd.f32 %v1034_v26, %v873_v16  ;;  %v1500_v9 = vmul.f32 %v1404_v49, %v1104_v21 }
 0x24d   : > { %v1036_v8 = vpop.f32.mrf.mxu1 }
 0x24e   : > { %v1657_v46 = vadd.f32 %v1627_v58, %v1625_v25  ;;  %v1106_v44 = vmax.f32 %v1035_v10, 0.0  ;;  %v1628_v43 = vmul.f32 %v1553_v12, %v1500_v9  ;;  %v1037_v11 = vadd.f32 %v1036_v8, %v878_v56  ;;  %v1573_v21 = vpop.permute.xlu0 %1572 }
 0x24f   : > { %v1501_v38 = vmul.f32 %v1408_v5, %v1105_v27  ;;  %v1038_v48 = vpop.f32.mrf.mxu1 }
 0x250   : > { %v1678_v40 = vadd.f32 %v1628_v43, %v1626_v14  ;;  %v1107_v42 = vmax.f32 %v1037_v11, 0.0  ;;  %v1039_v41 = vadd.f32 %v1038_v48, %v878_v56  ;;  %v1502_v36 = vmul.f32 %v1410_v24, %v1106_v44  ;;  %v888_v56 = vpop.permute.xlu1 %887 }
 0x251   : > { %v1629_v39 = vmul.f32 %v1558_v13, %v1501_v38  ;;  %v1042_v37 = vpop.f32.mrf.mxu1 }
 0x252   : > { %v1108_v30 = vmax.f32 %v1039_v41, 0.0  ;;  %v1630_v31 = vmul.f32 %v1558_v13, %v1502_v36  ;;  %v1503_v35 = vmul.f32 %v1414_v6, %v1107_v42  ;;  %v1043_v23 = vadd.f32 %v1042_v37, %v2938_v53  ;;  %v2980_v9 = vpop.permute.xlu0 %1577 }
 0x253   : > { %v1658_v33 = vadd.f32 %v1657_v46, %v1629_v39  ;;  %v1044_v29 = vpop.f32.mrf.mxu1 }
 0x254   : > { %v1679_v32 = vadd.f32 %v1678_v40, %v1630_v31  ;;  %v1631_v50 = vmul.f32 %v1563_v45, %v1503_v35  ;;  %v1504_v28 = vmul.f32 %v1416_v34, %v1108_v30  ;;  %v893_v3 = vpop.permute.xlu1 %892  ;;  %v1045_v25 = vadd.f32 %v1044_v29, %v2938_v53 }
 0x255   : > { %v1046_v52 = vpop.f32.mrf.mxu1  ;;  %v1109_v58 = vmax.f32 %v1043_v23, 0.0 }
 0x256   : > { %v1659_v55 = vadd.f32 %v1658_v33, %v1631_v50  ;;  %v1632_v59 = vmul.f32 %v1563_v45, %v1504_v28  ;;  %v1047_v10 = vadd.f32 %v1046_v52, %v888_v56  ;;  %v1110_v14 = vmax.f32 %v1045_v25, 0.0  ;;  %v2982_v39 = vpop.permute.xlu0 %1582 }
 0x257   : > { %v1048_v4 = vpop.f32.mrf.mxu1 }
 0x258   : > { %v1680_v17 = vadd.f32 %v1679_v32, %v1632_v59  ;;  %v898_v7 = vpop.permute.xlu1 %897  ;;  %v1049_v8 = vadd.f32 %v1048_v4, %v888_v56  ;;  %v1111_v43 = vmax.f32 %v1047_v10, 0.0 }
 0x259   : > { %v1052_v16 = vpop.f32.mrf.mxu1 }
 0x25a   : > { %v1053_v11 = vadd.f32 %v1052_v16, %v893_v3  ;;  %v1112_v42 = vmax.f32 %v1049_v8, 0.0  ;;  %v1588_v4 = vpop.permute.xlu0 %1587 }
 0x25b   : > { %v2940_v51 = vpop.f32.mrf.mxu1 }
 0x25c   : > { %v903_v19 = vpop.permute.xlu1 %902  ;;  %v1113_v30 = vmax.f32 %v1053_v11, 0.0 }
 0x25d   : > { %v2942_v57 = vpop.f32.mrf.mxu1 }
 0x25e   : > { %v1593_v25 = vpop.permute.xlu0 %1592  ;;  %v1057_v10 = vadd.f32 %v2942_v57, %v898_v7 }
 0x25f   : > { %v2944_v62 = vpop.f32.mrf.mxu1 }
 0x260   : > { %v908_v26 = vpop.permute.xlu1 %907  ;;  %v1115_v11 = vmax.f32 %v1057_v10, 0.0 }
 0x261   : > { %v2946_v54 = vpop.f32.mrf.mxu1 }
 0x263   : > { %v2948_v49 = vpop.f32.mrf.mxu1 }
 0x264   : > { %v913_v48 = vpop.permute.xlu1 %912 }
 0x265   : > { %v2950_v47 = vpop.f32.mrf.mxu1 }
 0x267   : > { %v2952_v15 = vpop.f32.mrf.mxu1 }
 0x268   : > { %v918_v50 = vpop.permute.xlu1 %917 }
 0x269   : > { %v2954_v60 = vpop.f32.mrf.mxu1 }
 0x26b   : > { %v2956_v61 = vpop.f32.mrf.mxu1 }
 0x26d   : > { %v2958_v63 = vpop.f32.mrf.mxu1 }
 0x26f   : > { %v2960_v5 = vpop.f32.mrf.mxu1 }
 0x271   : > { %v2962_v12 = vpop.f32.mrf.mxu1 }
 0x273   : > { %v2964_v0 = vpop.f32.mrf.mxu1 }
 0x275   : > { %v2966_v1 = vpop.f32.mrf.mxu1 }
 0x277   : > { %v2968_v18 = vpop.f32.mrf.mxu1 }
 0x279   : > { %v2970_v20 = vpop.f32.mrf.mxu1 }
 0x27b   : > { %v2972_v22 = vpop.f32.mrf.mxu1 }
 0x27d   : > { %v2975_v24 = vpop.f32.mrf.mxu1 }
 0x27f   : > { %v2978_v27 = vpop.f32.mrf.mxu1 }
 0x281   : > { %v1420_v13 = vpop.f32.mrf.mxu1 }
 0x282   : > { %v1505_v46 = vmul.f32 %v1420_v13, %v1109_v58 }
 0x283   : > { %v1422_v44 = vpop.f32.mrf.mxu1 }
 0x284   : > { %v1633_v6 = vmul.f32 %v1568_v2, %v1505_v46  ;;  %v1506_v38 = vmul.f32 %v1422_v44, %v1110_v14  ;;  %v1063_v14 = vadd.f32 %v2946_v54, %v903_v19  ;;  %v1065_v44 = vadd.f32 %v2948_v49, %v903_v19 }
 0x285   : > { %v1426_v40 = vpop.f32.mrf.mxu1 }
 0x286   : > { %v1660_v53 = vadd.f32 %v1659_v55, %v1633_v6  ;;  %v1634_v41 = vmul.f32 %v1568_v2, %v1506_v38  ;;  %v1507_v36 = vmul.f32 %v1426_v40, %v1111_v43  ;;  %v923_v2 = vpop.permute.xlu1 %922  ;;  %v1067_v6 = vadd.f32 %v2950_v47, %v908_v26  ;;  %v1598_v38 = vpop.permute.xlu0 %1597 }
 0x287   : > { %v1428_v37 = vpop.f32.mrf.mxu1  ;;  %v1079_v47 = vadd.f32 %v2960_v5, %v918_v50 }
 0x288   : > { %v1681_v31 = vadd.f32 %v1680_v17, %v1634_v41  ;;  %v1635_v35 = vmul.f32 %v1573_v21, %v1507_v36  ;;  %v1508_v34 = vmul.f32 %v1428_v37, %v1112_v42  ;;  %v1055_v17 = vadd.f32 %v2940_v51, %v893_v3 }
 0x289   : > { %v1432_v45 = vpop.f32.mrf.mxu1  ;;  %v1069_v51 = vadd.f32 %v2952_v15, %v908_v26  ;;  %v1073_v3 = vadd.f32 %v2954_v60, %v913_v48  ;;  %v1077_v41 = vadd.f32 %v2958_v63, %v918_v50  ;;  %v1119_v36 = vmax.f32 %v1067_v6, 0.0 }
 0x28a   : > { %v1661_v33 = vadd.f32 %v1660_v53, %v1635_v35  ;;  %v1636_v29 = vmul.f32 %v1573_v21, %v1508_v34  ;;  %v1509_v32 = vmul.f32 %v1432_v45, %v1113_v30  ;;  %v1059_v21 = vadd.f32 %v2944_v62, %v898_v7  ;;  %v928_v8 = vpop.permute.xlu1 %927 }
 0x28b   : > { %v1434_v28 = vpop.f32.mrf.mxu1  ;;  %v1114_v46 = vmax.f32 %v1055_v17, 0.0  ;;  %v1117_v62 = vmax.f32 %v1063_v14, 0.0  ;;  %v1075_v7 = vadd.f32 %v2956_v61, %v913_v48  ;;  %v1118_v53 = vmax.f32 %v1065_v44, 0.0 }
 0x28c   : > { %v1682_v52 = vadd.f32 %v1681_v31, %v1636_v29  ;;  %v1637_v59 = vmul.f32 %v2980_v9, %v1509_v32  ;;  %v1116_v40 = vmax.f32 %v1059_v21, 0.0  ;;  %v1083_v37 = vadd.f32 %v2962_v12, %v923_v2 }
 0x28d   : > { %v1438_v55 = vpop.f32.mrf.mxu1  ;;  %v1510_v57 = vmul.f32 %v1434_v28, %v1114_v46  ;;  %v1120_v26 = vmax.f32 %v1069_v51, 0.0  ;;  %v1121_v60 = vmax.f32 %v1073_v3, 0.0  ;;  %v1122_v61 = vmax.f32 %v1075_v7, 0.0 }
 0x28e   : > { %v1662_v16 = vadd.f32 %v1661_v33, %v1637_v59  ;;  %v1511_v54 = vmul.f32 %v1438_v55, %v1115_v11  ;;  %v933_v15 = vpop.permute.xlu1 %932  ;;  %v1085_v48 = vadd.f32 %v2964_v0, %v923_v2  ;;  %v1603_v33 = vpop.permute.xlu0 %1602  ;;  %v1123_v29 = vmax.f32 %v1077_v41, 0.0 }
 0x28f   : > { %v1440_v56 = vpop.f32.mrf.mxu1  ;;  %v1638_v31 = vmul.f32 %v2980_v9, %v1510_v57  ;;  %v1087_v5 = vadd.f32 %v2966_v1, %v928_v8  ;;  %v1124_v28 = vmax.f32 %v1079_v47, 0.0  ;;  %v1125_v59 = vmax.f32 %v1083_v37, 0.0 }
 0x290   : > { %v1512_v49 = vmul.f32 %v1440_v56, %v1116_v40  ;;  %v1639_v63 = vmul.f32 %v2982_v39, %v1511_v54  ;;  %v1089_v56 = vadd.f32 %v2968_v18, %v928_v8  ;;  %v1093_v11 = vadd.f32 %v2970_v20, %v933_v15 }
 0x291   : > { %v1444_v23 = vpop.f32.mrf.mxu1  ;;  %v1127_v1 = vmax.f32 %v1087_v5, 0.0 }
 0x292   : > { %v1513_v30 = vmul.f32 %v1444_v23, %v1117_v62  ;;  %v1640_v12 = vmul.f32 %v2982_v39, %v1512_v49  ;;  %v1683_v23 = vadd.f32 %v1682_v52, %v1638_v31  ;;  %v1663_v10 = vadd.f32 %v1662_v16, %v1639_v63  ;;  %v938_v14 = vpop.permute.xlu1 %937  ;;  %v1608_v18 = vpop.permute.xlu0 %1607 }
 0x293   : > { %v1446_v58 = vpop.f32.mrf.mxu1  ;;  %v1128_v52 = vmax.f32 %v1089_v56, 0.0  ;;  %v1129_v20 = vmax.f32 %v1093_v11, 0.0  ;;  %v1707_v11 = vlaneseq }
 0x294   : > { %v1514_v35 = vmul.f32 %v1446_v58, %v1118_v53  ;;  %v1641_v55 = vmul.f32 %v1588_v4, %v1513_v30  ;;  %v1126_v58 = vmax.f32 %v1085_v48, 0.0  ;;  %v1684_v46 = vadd.f32 %v1683_v23, %v1640_v12 }
 0x295   : > { %v1450_v13 = vpop.f32.mrf.mxu1  ;;  %vm1721_vm2 = vcmp.lt.s32.totalorder %v1707_v11, 256 }
 0x296   : > { %v1515_v45 = vmul.f32 %v1450_v13, %v1119_v36  ;;  %v1642_v17 = vmul.f32 %v1588_v4, %v1514_v35  ;;  %v1664_v6 = vadd.f32 %v1663_v10, %v1641_v55  ;;  %v1095_v4 = vadd.f32 %v2972_v22, %v933_v15  ;;  %v1613_v47 = vpop.permute.xlu1 %1612  ;;  %v1618_v35 = vpop.permute.xlu0 %1617 }
 0x297   : > { %v1452_v43 = vpop.f32.mrf.mxu1  ;;  %v1099_v22 = vadd.f32 %v2978_v27, %v938_v14 }
 0x298   : > { %v1516_v32 = vmul.f32 %v1452_v43, %v1120_v26  ;;  %v1643_v21 = vmul.f32 %v1593_v25, %v1515_v45  ;;  %v1685_v8 = vadd.f32 %v1684_v46, %v1642_v17  ;;  %v1130_v37 = vmax.f32 %v1095_v4, 0.0 }
 0x299   : > { %v1456_v42 = vpop.f32.mrf.mxu1 }
 0x29a   : > { %v1517_v9 = vmul.f32 %v1456_v42, %v1121_v60  ;;  %v1644_v39 = vmul.f32 %v1593_v25, %v1516_v32  ;;  %v1665_v57 = vadd.f32 %v1664_v6, %v1643_v21  ;;  %v1097_v25 = vadd.f32 %v2975_v24, %v938_v14 }
 0x29b   : > { %v1458_v19 = vpop.f32.mrf.mxu1 }
 0x29c   : > { %v1518_v0 = vmul.f32 %v1458_v19, %v1122_v61  ;;  %v1645_v40 = vmul.f32 %v1598_v38, %v1517_v9  ;;  %v1686_v54 = vadd.f32 %v1685_v8, %v1644_v39  ;;  %v1708_v8 = vshrl.u32 %v1707_v11, 7 }
 0x29d   : > { %v1462_v34 = vpop.f32.mrf.mxu1 }
 0x29e   : > { %v1519_v13 = vmul.f32 %v1462_v34, %v1123_v29  ;;  %v1646_v3 = vmul.f32 %v1598_v38, %v1518_v0  ;;  %v1666_v49 = vadd.f32 %v1665_v57, %v1645_v40  ;;  %v1131_v34 = vmax.f32 %v1097_v25, 0.0 }
 0x29f   : > { %v1464_v50 = vpop.f32.mrf.mxu1  ;;  %v1132_v29 = vmax.f32 %v1099_v22, 0.0 }
 0x2a0   : > { %v1520_v44 = vmul.f32 %v1464_v50, %v1124_v28  ;;  %v1647_v42 = vmul.f32 %v1603_v33, %v1519_v13  ;;  %v1687_v30 = vadd.f32 %v1686_v54, %v1646_v3  ;;  %v1623_v28 = vpop.permute.xlu1 %1622 }
 0x2a1   : > { %v1468_v2 = vpop.f32.mrf.mxu1 }
 0x2a2   : > { %v1521_v51 = vmul.f32 %v1468_v2, %v1125_v59  ;;  %v1648_v53 = vmul.f32 %v1603_v33, %v1520_v44  ;;  %v1667_v15 = vadd.f32 %v1666_v49, %v1647_v42  ;;  %v2190_v44 = vmov 1966171168  }
 0x2a3   : > { %v1470_v43 = vpop.f32.mrf.mxu1 }
 0x2a4   : > { %v1522_v62 = vmul.f32 %v1470_v43, %v1126_v58  ;;  %v1649_v19 = vmul.f32 %v1608_v18, %v1521_v51  ;;  %v1688_v24 = vadd.f32 %v1687_v30, %v1648_v53  ;;  %v1705_v43 = vunpack.c.l.s4 %v2190_v44 }
 0x2a5   : > { %v1474_v16 = vpop.f32.mrf.mxu1 }
 0x2a6   : > { %v1523_v7 = vmul.f32 %v1474_v16, %v1127_v1  ;;  %v1650_v26 = vmul.f32 %v1608_v18, %v1522_v62  ;;  %v1668_v48 = vadd.f32 %v1667_v15, %v1649_v19  ;;  %v1706_v4 = vunpack.c.0.s8 %v1705_v43 }
 0x2a7   : > { %v1476_v41 = vpop.f32.mrf.mxu1 }
 0x2a8   : > { %v1524_v36 = vmul.f32 %v1476_v41, %v1128_v52  ;;  %v1651_v60 = vmul.f32 %v1613_v47, %v1523_v7  ;;  %v1689_v12 = vadd.f32 %v1688_v24, %v1650_v26  ;;  %v1709_v62 = vsub.s32 %v1706_v4, %v1708_v8 }
 0x2a9   : > { %v1480_v38 = vpop.f32.mrf.mxu1 }
 0x2aa   : > { %v1525_v31 = vmul.f32 %v1480_v38, %v1129_v20  ;;  %v1652_v63 = vmul.f32 %v1613_v47, %v1524_v36  ;;  %v1669_v32 = vadd.f32 %v1668_v48, %v1651_v60 }
 0x2ab   : > { %v1482_v61 = vpop.f32.mrf.mxu1 }
 0x2ac   : > { %v1653_v45 = vmul.f32 %v1618_v35, %v1525_v31  ;;  %v1526_v33 = vmul.f32 %v1482_v61, %v1130_v37  ;;  %v1690_v55 = vadd.f32 %v1689_v12, %v1652_v63 }
 0x2ad   : > { %v1486_v5 = vpop.f32.mrf.mxu1 }
 0x2ae   : > { %v1654_v50 = vmul.f32 %v1618_v35, %v1526_v33  ;;  %v1527_v27 = vmul.f32 %v1486_v5, %v1131_v34  ;;  %v1670_v9 = vadd.f32 %v1669_v32, %v1653_v45 }
 0x2af   : > { %v1488_v59 = vpop.f32.mrf.mxu1 }
 0x2b0   : > { %v1655_v56 = vmul.f32 %v1623_v28, %v1527_v27  ;;  %v1528_v23 = vmul.f32 %v1488_v59, %v1132_v29  ;;  %v1691_v17 = vadd.f32 %v1690_v55, %v1654_v50 }
 0x2b1   : > { %v1492_v51 = vpop.f32.mrf.mxu1 }
 0x2b2   : > { %v1671_v0 = vadd.f32 %v1670_v9, %v1655_v56  ;;  %v1656_v2 = vmul.f32 %v1623_v28, %v1528_v23 }
 0x2b3   : > { %v1494_v16 = vpop.f32.mrf.mxu1 }
 0x2b4   : > { %v1672_v58 = vrot.slane %v1671_v0, 4  ;;  %v1692_v10 = vadd.f32 %v1691_v17, %v1656_v2 }
 0x2b6   : > { %v1693_v21 = vrot.slane %v1692_v10, 4  ;;  %v1673_v13 = vadd.f32 %v1672_v58, %v1671_v0 }
 0x2b8   : > { %v1674_v14 = vrot.slane %v1673_v13, 2  ;;  %v1694_v1 = vadd.f32 %v1693_v21, %v1692_v10 }
 0x2ba   : > { %v1675_v46 = vadd.f32 %v1674_v14, %v1673_v13  ;;  %v1695_v39 = vrot.slane %v1694_v1, 2 }
 0x2bc   : > { %v1676_v6 = vrot.slane %v1675_v46, 1  ;;  %v1696_v40 = vadd.f32 %v1695_v39, %v1694_v1 }
 0x2be   : > { %v1677_v18 = vadd.f32 %v1676_v6, %v1675_v46  ;;  %v1697_v52 = vrot.slane %v1696_v40, 1 }
 0x2c0   : > { %v1698_v3 = vadd.f32 %v1697_v52, %v1696_v40  ;;  %v1699_v57 = vadd.f32 %v1677_v18, %v1492_v51 }
 0x2c2   : > { %v1700_v42 = vadd.f32 %v1698_v3, %v1494_v16 }
 0x2c4   : > { %v1703_v7 = vcombine.low %v1699_v57, %v1700_v42 }
 0x2c6   : > { %v1710_v25 = vrot.slane %v1703_v7, %v1709_v62 }
 0x2c8   : > { %v1717_v54 = vrot.slane %v1710_v25, %v1709_v62 }
 0x2ca   : > { %1723 = vst.msk [vmem:[%s315_s20] sm:$0x3] %vm1721_vm2, %v1717_v54 }
 0x2cb   : > { %2140 = shalt.err (!%p2137_p3)
}
 0x2cc   : > { %s2141_s19 = scalar_lea.hbm %s1737_s25, 32  ;;  %s2145_s10 = scalar_lea.hbm %s3049_s8, 128 }
 0x2cd   : > { %p2142_p4 = scmp.ne.s32.totalorder %s1737_s25, %s2141_s19  ;;  %p2146_p9 = scmp.lt.s32.totalorder %s1737_s25, %s3049_s8 }
 0x2ce   : > { %p2147_p10 = scmp.lt.s32.totalorder %s2145_s10, %s2141_s19 }
 0x2cf   : > { %p2143_p7 = pnand %p2142_p4, %p2272_p5 }
 0x2d0   : > { %p2148_p11 = por %p2147_p10, %p2146_p9 }
 0x2d1   : > { %p2144_p8 = pneg %p2143_p7 }
 0x2d3   : > { %p2149_p12 = pnand %p2148_p11, %p2144_p8 }
 0x2d5   : > { %2152 = shalt.err (!%p2149_p12)
}
 0x2d6   : > { %2052 = dma.vmem_to_hbm [thread:$0]  (%p2272_p5), %s1740_s22, 32, %s1737_s25, %s1725_s26  }
 0x2d7 PF: > { %p2058_p13 = scmp.ge.s32.totalorder %s2187_s30, 2  ;;  %s1751_s24 = sand.u32 1, %s2175_s27  }
 0x2d8   : > { %s1752_s9 = scalar_lea.sflag [#allocation3], %s1751_s24 }
 0x2d9   : > { %p2055_p0 = pnand %p2058_p13, %p2276_p6 }
 0x2db   : > { %p2056_p1 = pneg %p2055_p0 }
 0x2dd   : > { %2170 = dma.done.wait (%p2056_p1), %s1752_s9, 32  }
 0x2de   : > { %2172 = vsyncadd (%p2056_p1), %s1752_s9, 4294967264  ;;  %p18_p2 = scmp.ge.s32.totalorder %s2260_s11, 6   ;;  %s3121_s27 = smov %s2179_s28 }
 0x2df   : > { %s3122_s28 = smov %s2183_s29  ;;  %s3123_s29 = smov %s2270_s14 }
 0x2e0   : > { %s3124_s30 = smov %s2260_s11  ;;  %20 = sbr.rel (!%p18_p2) target bundleno = 3 (0x3), region = 90 }
 0x2e5   :  { %1757 = vsyncpa [#allocation3], 1 }
 0x2e6   :  { %1759 = vsyncpa [#allocation3 + $0x1], 1 }

</bundles_post_ra>
